<compile_context>
chip_gen: v7x
topology: tpu7x:2x2x1
jax: 0.10.0
libtpu: 0.0.40
codegen_flags: <defaults>
</compile_context>

<pallas_src>
import jax
import jax.numpy as jnp
import numpy as np
from jax import lax
from jax.experimental import pallas as pl
from jax.experimental.pallas import tpu as pltpu

_EPS2 = 1e-24                     # (F.normalize eps=1e-12 clamp on the L2 norm)^2
_VMEM_LIMIT = 64 * 1024 * 1024    # raise scoped VMEM; leaves headroom on v7x (64 MiB)


def _ann_tile(ann_num, target=16):
    """Ann-axis tile: full axis when small, else a multiple of 8 sized so that
    the double-buffered (TA, 49, C) input copies stay ~<=24 MiB at C=2048."""
    if ann_num <= max(8, target):
        return ann_num            # block == full dim (satisfies the (8,128) rule)
    return max(8, (target // 8) * 8)


# ---------------------------------------------------------------------------
# Kernel 1: fused feature encoder (pool5 / fc7 normalize+mean, fleats + fc)
# ---------------------------------------------------------------------------
def _feat_encode_kernel(p5_ref, f7_ref, fl_ref,
                        p5w_ref, f7w_ref, flw_ref, fcw_ref, fcb_ref,
                        p5o_ref, f7o_ref, flo_ref):
    # Blocks: p5_ref (TA, 49, P), f7_ref (TA, 49, F), fl_ref (TA, 5)
    # Weights: (1, P), (1, F), (1, 5), fc: (5, J), (1, J)
    # Outputs: (TA, P), (TA, F), (TA, J)

    def l2_mean(x_ref):
        # Per-(ann, grid) L2 normalize over channels (lane axis), then mean
        # over the 49 grids (sublane axis).  rsqrt == 1/max(||x||, 1e-12).
        x = x_ref[...].astype(jnp.float32)                    # (TA, G, C)
        ssq = jnp.sum(x * x, axis=-1, keepdims=True)          # (TA, G, 1)
        inv = lax.rsqrt(jnp.maximum(ssq, _EPS2))              # EUP slot
        return jnp.mean(x * inv, axis=1)                      # (TA, C)

    # Per-channel Normalize_Scale weight commutes with the grid mean:
    # apply it once on the (TA, C) result, not on the (TA, 49, C) tile.
    p5o_ref[...] = l2_mean(p5_ref) * p5w_ref[...]
    f7o_ref[...] = l2_mean(f7_ref) * f7w_ref[...]

    # fleats: L2 normalize over 5 dims, scale, Linear(5 -> J).
    x = fl_ref[...].astype(jnp.float32)                       # (TA, 5)
    ssq = jnp.sum(x * x, axis=-1, keepdims=True)
    xn = x * lax.rsqrt(jnp.maximum(ssq, _EPS2)) * flw_ref[...]
    w = fcw_ref[...]                                          # (5, J)
    out = jnp.broadcast_to(fcb_ref[...], (xn.shape[0], w.shape[1]))
    for k in range(5):   # K=5: broadcast-MACs on the VPU beat a padded MXU pass
        out = out + xn[:, k:k + 1] * w[k:k + 1, :]
    flo_ref[...] = out


def encode_features(ap5, af7, fleats, params, *, ann_tile=16):
    """ap5: (A, 49, P), af7: (A, 49, F), fleats: (A, 5) -> (A,P), (A,F), (A,J)."""
    A, G, P = ap5.shape
    F = af7.shape[2]
    J = params["fc_w_t"].shape[1]
    TA = _ann_tile(A, ann_tile)

    return pl.pallas_call(
        _feat_encode_kernel,
        out_shape=(jax.ShapeDtypeStruct((A, P), jnp.float32),
                   jax.ShapeDtypeStruct((A, F), jnp.float32),
                   jax.ShapeDtypeStruct((A, J), jnp.float32)),
        grid=(pl.cdiv(A, TA),),
        in_specs=[
            pl.BlockSpec((TA, G, P), lambda i: (i, 0, 0)),
            pl.BlockSpec((TA, G, F), lambda i: (i, 0, 0)),
            pl.BlockSpec((TA, 5), lambda i: (i, 0)),
            pl.BlockSpec((1, P), lambda i: (0, 0)),    # resident weights
            pl.BlockSpec((1, F), lambda i: (0, 0)),
            pl.BlockSpec((1, 5), lambda i: (0, 0)),
            pl.BlockSpec((5, J), lambda i: (0, 0)),
            pl.BlockSpec((1, J), lambda i: (0, 0)),
        ],
        out_specs=(pl.BlockSpec((TA, P), lambda i: (i, 0)),
                   pl.BlockSpec((TA, F), lambda i: (i, 0)),
                   pl.BlockSpec((TA, J), lambda i: (i, 0))),
        compiler_params=pltpu.CompilerParams(
            dimension_semantics=("parallel",),
            vmem_limit_bytes=_VMEM_LIMIT,
        ),
    )(ap5, af7, fleats, params["pool5_w"], params["fc7_w"],
      params["lfeats_w"], params["fc_w_t"], params["fc_b"])


# ---------------------------------------------------------------------------
# Kernel 2: fused pair expansion (replaces expands() + concat XLA glue)
# ---------------------------------------------------------------------------
def _pair_expand_kernel(p5_ref, f7_ref, fl_ref,
                        pair_ref, e1p5_ref, e1f7_ref, e1fl_ref,
                        e0p5_ref, e0f7_ref, e0fl_ref):
    # Grid point (s, i): write all pairs (i, j), j = 0..A-1, exactly once.
    # Inputs are the full (A, D) feature tables (constant block index => kept
    # resident in VMEM); each output block is one full-width, lane-dense store.
    i = pl.program_id(1)

    p5 = p5_ref[...]                                           # (A, P) expand_0
    f7 = f7_ref[...]                                           # (A, F)
    fl = fl_ref[...]                                           # (A, J)
    r_p5 = jnp.broadcast_to(p5_ref[pl.ds(i, 1), :], p5.shape)  # row i -> (A, P)
    r_f7 = jnp.broadcast_to(f7_ref[pl.ds(i, 1), :], f7.shape)
    r_fl = jnp.broadcast_to(fl_ref[pl.ds(i, 1), :], fl.shape)

    e1p5_ref[...] = r_p5
    e1f7_ref[...] = r_f7
    e1fl_ref[...] = r_fl
    e0p5_ref[...] = p5
    e0f7_ref[...] = f7
    e0fl_ref[...] = fl
    # pair_feats = [fc7_i | fleats_i | fc7_j | fleats_j]
    pair_ref[...] = jnp.concatenate([r_f7, r_fl, f7, fl], axis=-1)


def pair_expand(pool5_m, fc7_m, fleats_j, sent_num):
    A, P = pool5_m.shape
    F = fc7_m.shape[1]
    J = fleats_j.shape[1]
    Dp = 2 * (F + J)

    def oshape(D):
        return jax.ShapeDtypeStruct((sent_num, A, A, D), jnp.float32)

    def ospec(D):
        return pl.BlockSpec((None, None, A, D), lambda s, i: (s, i, 0, 0))

    # NOTE: for very large ann_num the inner (j) axis can be tiled as well; at
    # typical sizes one (A, D) block per output per step fits comfortably.
    outs = pl.pallas_call(
        _pair_expand_kernel,
        out_shape=(oshape(Dp), oshape(P), oshape(F), oshape(J),
                   oshape(P), oshape(F), oshape(J)),
        grid=(sent_num, A),
        in_specs=[
            pl.BlockSpec((A, P), lambda s, i: (0, 0)),   # resident tables
            pl.BlockSpec((A, F), lambda s, i: (0, 0)),
            pl.BlockSpec((A, J), lambda s, i: (0, 0)),
        ],
        out_specs=(ospec(Dp), ospec(P), ospec(F), ospec(J),
                   ospec(P), ospec(F), ospec(J)),
        compiler_params=pltpu.CompilerParams(
            dimension_semantics=("parallel", "parallel"),
            vmem_limit_bytes=_VMEM_LIMIT,
        ),
    )(pool5_m, fc7_m, fleats_j)

    pair4, e1p5, e1f7, e1fl, e0p5, e0f7, e0fl = outs
    AA = A * A      # (S, A, A, D) -> (S, A*A, D) is a free row-major reshape
    return (pair4.reshape(sent_num, AA, Dp),
            e1p5.reshape(sent_num, AA, P), e1f7.reshape(sent_num, AA, F),
            e1fl.reshape(sent_num, AA, J), e0p5.reshape(sent_num, AA, P),
            e0f7.reshape(sent_num, AA, F), e0fl.reshape(sent_num, AA, J))


# ---------------------------------------------------------------------------
# PairEncoder forward
# ---------------------------------------------------------------------------
def pair_encoder_forward(pool5, ann_pool5, ann_fc7, ann_fleats, params, *, ann_tile=16):
    sent_num, ann_num = pool5.shape[0], pool5.shape[1]
    P = ann_pool5.shape[1]
    F = ann_fc7.shape[1]
    G = ann_pool5.shape[2] * ann_pool5.shape[3]        # forward uses 7*7 = 49 grids

    # NCHW (ann, C, 7, 7) -> channel-last (ann, 49, C): channels on the 128-lane
    # axis inside the kernel, grids on sublanes.
    # TODO(synk): get channel-last from the producer (or read NCHW blocks
    # directly and reduce over the sublane C axis) to drop this one extra HBM
    # round-trip of the conv feature maps.
    ap5 = jnp.transpose(ann_pool5.reshape(ann_num, P, G), (0, 2, 1))
    af7 = jnp.transpose(ann_fc7.reshape(ann_num, F, G), (0, 2, 1))

    p5m, f7m, flj = encode_features(ap5, af7, ann_fleats.reshape(ann_num, 5),
                                    params, ann_tile=ann_tile)
    # PyTorch hardcodes 512 for the fleats expansion width == jemb_dim; we use
    # jemb_dim consistently.
    return pair_expand(p5m, f7m, flj, sent_num)


# ---------------------------------------------------------------------------
# Parameters (shapes per __init__) and a pure-JAX reference for validation
# ---------------------------------------------------------------------------
def make_params(key, pool5_dim, fc7_dim, jemb_dim, init_norm=20.0):
    k_w, k_b = jax.random.split(key)
    fc_w = jax.random.normal(k_w, (jemb_dim, 5), jnp.float32) * 0.1  # nn.Linear(5, jemb)
    fc_b = jax.random.normal(k_b, (jemb_dim,), jnp.float32) * 0.1
    return {
        "pool5_w": jnp.full((1, pool5_dim), init_norm, jnp.float32),
        "fc7_w": jnp.full((1, fc7_dim), init_norm, jnp.float32),
        "lfeats_w": jnp.full((1, 5), init_norm, jnp.float32),
        "fc_w_t": fc_w.T,                       # (5, jemb_dim)
        "fc_b": fc_b.reshape(1, jemb_dim),      # (1, jemb_dim)
    }


def _reference_forward(pool5, ann_pool5, ann_fc7, ann_fleats, params):
    """Direct XLA transcription of the PyTorch forward (for numeric checking)."""
    sent_num, ann_num = pool5.shape[0], pool5.shape[1]
    P, F = ann_pool5.shape[1], ann_fc7.shape[1]
    G = ann_pool5.shape[2] * ann_pool5.shape[3]

    def norm_scale(x, w):
        n = jnp.sqrt(jnp.sum(x * x, axis=1, keepdims=True))
        return x / jnp.maximum(n, 1e-12) * w

    ap5 = jnp.transpose(ann_pool5.reshape(ann_num, P, G), (0, 2, 1)).reshape(-1, P)
    p5m = norm_scale(ap5, params["pool5_w"]).reshape(ann_num, G, P).mean(axis=1)
    af7 = jnp.transpose(ann_fc7.reshape(ann_num, F, G), (0, 2, 1)).reshape(-1, F)
    f7m = norm_scale(af7, params["fc7_w"]).reshape(ann_num, G, F).mean(axis=1)
    flj = norm_scale(ann_fleats.reshape(-1, 5), params["lfeats_w"]) @ params["fc_w_t"] \
        + params["fc_b"]

    def expands(feat):
        D = feat.shape[1]
        e1 = jnp.broadcast_to(feat[:, None, :], (ann_num, ann_num, D)).reshape(-1, D)
        e0 = jnp.broadcast_to(feat[None, :, :], (ann_num, ann_num, D)).reshape(-1, D)
        to3 = lambda e: jnp.broadcast_to(e[None], (sent_num, ann_num * ann_num, D))
        return to3(e1), to3(e0)

    e1p5, e0p5 = expands(p5m)
    e1f7, e0f7 = expands(f7m)
    e1fl, e0fl = expands(flj)
    pair = jnp.concatenate([e1f7, e1fl, e0f7, e0fl], axis=2)
    return pair, e1p5, e1f7, e1fl, e0p5, e0f7, e0fl


if __name__ == "__main__":
    sent_num, ann_num = 2, 3
    pool5_dim, fc7_dim, jemb_dim = 32, 64, 32
    H = W = 7  # forward hardcodes 49 grids

    key = jax.random.PRNGKey(0)
    k1, k2, k3, k4, kp = jax.random.split(key, 5)

    pool5 = jax.random.normal(k1, (sent_num, ann_num, pool5_dim, H, W), jnp.float32)
    ann_pool5 = jax.random.normal(k2, (ann_num, pool5_dim, H, W), jnp.float32)
    ann_fc7 = jax.random.normal(k3, (ann_num, fc7_dim, H, W), jnp.float32)
    ann_fleats = jax.random.normal(k4, (ann_num, 5), jnp.float32)

    params = make_params(kp, pool5_dim, fc7_dim, jemb_dim)

    fwd = jax.jit(pair_encoder_forward)
    outs = jax.block_until_ready(fwd(pool5, ann_pool5, ann_fc7, ann_fleats, params))

    # shape checks: pair_feats = (sent, ann*ann, 2*(fc7_dim + jemb_dim))
    AA = ann_num * ann_num
    assert outs[0].shape == (sent_num, AA, 2 * (fc7_dim + jemb_dim))
    assert outs[1].shape == (sent_num, AA, pool5_dim)
    assert outs[4].shape == (sent_num, AA, pool5_dim)

    # numeric check against a pure-JAX transcription of the PyTorch forward
    ref = _reference_forward(pool5, ann_pool5, ann_fc7, ann_fleats, params)
    for got, want in zip(outs, ref):
        np.testing.assert_allclose(np.asarray(got), np.asarray(want),
                                   rtol=2e-4, atol=2e-4)

    print("KERNEL_OK")
</pallas_src>

<mosaic_0001>
module attributes {stable_mosaic.version = 11 : i64} {
  func.func @_pair_expand_kernel(%arg0: i32, %arg1: i32, %arg2: memref<3x32xf32, #tpu.memory_space<vmem>>, %arg3: memref<3x64xf32, #tpu.memory_space<vmem>>, %arg4: memref<3x32xf32, #tpu.memory_space<vmem>>, %arg5: memref<1x1x3x192xf32, #tpu.memory_space<vmem>>, %arg6: memref<1x1x3x32xf32, #tpu.memory_space<vmem>>, %arg7: memref<1x1x3x64xf32, #tpu.memory_space<vmem>>, %arg8: memref<1x1x3x32xf32, #tpu.memory_space<vmem>>, %arg9: memref<1x1x3x32xf32, #tpu.memory_space<vmem>>, %arg10: memref<1x1x3x64xf32, #tpu.memory_space<vmem>>, %arg11: memref<1x1x3x32xf32, #tpu.memory_space<vmem>>) attributes {dimension_semantics = [#tpu.dimension_semantics<parallel>, #tpu.dimension_semantics<parallel>], iteration_bounds = array<i64: 2, 3>, scalar_prefetch = 0 : i64, scratch_operands = 0 : i64, tpu.core_type = #tpu.core_type<tc>, window_params = [{pipeline_mode = #tpu.pipeline_mode<synchronous>, transform_indices = @transform_0, window_bounds = array<i64: 3, 32>}, {pipeline_mode = #tpu.pipeline_mode<synchronous>, transform_indices = @transform_1, window_bounds = array<i64: 3, 64>}, {pipeline_mode = #tpu.pipeline_mode<synchronous>, transform_indices = @transform_2, window_bounds = array<i64: 3, 32>}, {transform_indices = @transform_3, window_bounds = array<i64: 1, 1, 3, 192>}, {transform_indices = @transform_4, window_bounds = array<i64: 1, 1, 3, 32>}, {transform_indices = @transform_5, window_bounds = array<i64: 1, 1, 3, 64>}, {transform_indices = @transform_6, window_bounds = array<i64: 1, 1, 3, 32>}, {transform_indices = @transform_7, window_bounds = array<i64: 1, 1, 3, 32>}, {transform_indices = @transform_8, window_bounds = array<i64: 1, 1, 3, 64>}, {transform_indices = @transform_9, window_bounds = array<i64: 1, 1, 3, 32>}]} {
    %c0 = arith.constant 0 : index
    %c0_0 = arith.constant 0 : index
    %0 = vector.load %arg2[%c0, %c0_0] : memref<3x32xf32, #tpu.memory_space<vmem>>, vector<3x32xf32>
    %c0_1 = arith.constant 0 : index
    %c0_2 = arith.constant 0 : index
    %1 = vector.load %arg3[%c0_1, %c0_2] : memref<3x64xf32, #tpu.memory_space<vmem>>, vector<3x64xf32>
    %c0_3 = arith.constant 0 : index
    %c0_4 = arith.constant 0 : index
    %2 = vector.load %arg4[%c0_3, %c0_4] : memref<3x32xf32, #tpu.memory_space<vmem>>, vector<3x32xf32>
    %3 = arith.index_cast %arg1 : i32 to index
    %c0_5 = arith.constant 0 : index
    %4 = vector.load %arg2[%3, %c0_5] : memref<3x32xf32, #tpu.memory_space<vmem>>, vector<1x32xf32>
    %5 = vector.shape_cast %4 : vector<1x32xf32> to vector<1x32xf32>
    %6 = vector.broadcast %5 : vector<1x32xf32> to vector<3x32xf32>
    %7 = arith.index_cast %arg1 : i32 to index
    %c0_6 = arith.constant 0 : index
    %8 = vector.load %arg3[%7, %c0_6] : memref<3x64xf32, #tpu.memory_space<vmem>>, vector<1x64xf32>
    %9 = vector.shape_cast %8 : vector<1x64xf32> to vector<1x64xf32>
    %10 = vector.broadcast %9 : vector<1x64xf32> to vector<3x64xf32>
    %11 = arith.index_cast %arg1 : i32 to index
    %c0_7 = arith.constant 0 : index
    %12 = vector.load %arg4[%11, %c0_7] : memref<3x32xf32, #tpu.memory_space<vmem>>, vector<1x32xf32>
    %13 = vector.shape_cast %12 : vector<1x32xf32> to vector<1x32xf32>
    %14 = vector.broadcast %13 : vector<1x32xf32> to vector<3x32xf32>
    %c0_8 = arith.constant 0 : index
    %c0_9 = arith.constant 0 : index
    %c0_10 = arith.constant 0 : index
    %c0_11 = arith.constant 0 : index
    %15 = vector.load %arg6[%c0_8, %c0_9, %c0_10, %c0_11] : memref<1x1x3x32xf32, #tpu.memory_space<vmem>>, vector<1x1x3x32xf32>
    %16 = vector.shape_cast %15 : vector<1x1x3x32xf32> to vector<3x32xf32>
    %17 = vector.shape_cast %6 : vector<3x32xf32> to vector<1x1x3x32xf32>
    tpu.vector_store %arg6[%c0_8, %c0_9, %c0_10, %c0_11], %17 {strides = array<i32>} : memref<1x1x3x32xf32, #tpu.memory_space<vmem>>, vector<1x1x3x32xf32>,
    %c0_12 = arith.constant 0 : index
    %c0_13 = arith.constant 0 : index
    %c0_14 = arith.constant 0 : index
    %c0_15 = arith.constant 0 : index
    %18 = vector.load %arg7[%c0_12, %c0_13, %c0_14, %c0_15] : memref<1x1x3x64xf32, #tpu.memory_space<vmem>>, vector<1x1x3x64xf32>
    %19 = vector.shape_cast %18 : vector<1x1x3x64xf32> to vector<3x64xf32>
    %20 = vector.shape_cast %10 : vector<3x64xf32> to vector<1x1x3x64xf32>
    tpu.vector_store %arg7[%c0_12, %c0_13, %c0_14, %c0_15], %20 {strides = array<i32>} : memref<1x1x3x64xf32, #tpu.memory_space<vmem>>, vector<1x1x3x64xf32>,
    %c0_16 = arith.constant 0 : index
    %c0_17 = arith.constant 0 : index
    %c0_18 = arith.constant 0 : index
    %c0_19 = arith.constant 0 : index
    %21 = vector.load %arg8[%c0_16, %c0_17, %c0_18, %c0_19] : memref<1x1x3x32xf32, #tpu.memory_space<vmem>>, vector<1x1x3x32xf32>
    %22 = vector.shape_cast %21 : vector<1x1x3x32xf32> to vector<3x32xf32>
    %23 = vector.shape_cast %14 : vector<3x32xf32> to vector<1x1x3x32xf32>
    tpu.vector_store %arg8[%c0_16, %c0_17, %c0_18, %c0_19], %23 {strides = array<i32>} : memref<1x1x3x32xf32, #tpu.memory_space<vmem>>, vector<1x1x3x32xf32>,
    %c0_20 = arith.constant 0 : index
    %c0_21 = arith.constant 0 : index
    %c0_22 = arith.constant 0 : index
    %c0_23 = arith.constant 0 : index
    %24 = vector.load %arg9[%c0_20, %c0_21, %c0_22, %c0_23] : memref<1x1x3x32xf32, #tpu.memory_space<vmem>>, vector<1x1x3x32xf32>
    %25 = vector.shape_cast %24 : vector<1x1x3x32xf32> to vector<3x32xf32>
    %26 = vector.shape_cast %0 : vector<3x32xf32> to vector<1x1x3x32xf32>
    tpu.vector_store %arg9[%c0_20, %c0_21, %c0_22, %c0_23], %26 {strides = array<i32>} : memref<1x1x3x32xf32, #tpu.memory_space<vmem>>, vector<1x1x3x32xf32>,
    %c0_24 = arith.constant 0 : index
    %c0_25 = arith.constant 0 : index
    %c0_26 = arith.constant 0 : index
    %c0_27 = arith.constant 0 : index
    %27 = vector.load %arg10[%c0_24, %c0_25, %c0_26, %c0_27] : memref<1x1x3x64xf32, #tpu.memory_space<vmem>>, vector<1x1x3x64xf32>
    %28 = vector.shape_cast %27 : vector<1x1x3x64xf32> to vector<3x64xf32>
    %29 = vector.shape_cast %1 : vector<3x64xf32> to vector<1x1x3x64xf32>
    tpu.vector_store %arg10[%c0_24, %c0_25, %c0_26, %c0_27], %29 {strides = array<i32>} : memref<1x1x3x64xf32, #tpu.memory_space<vmem>>, vector<1x1x3x64xf32>,
    %c0_28 = arith.constant 0 : index
    %c0_29 = arith.constant 0 : index
    %c0_30 = arith.constant 0 : index
    %c0_31 = arith.constant 0 : index
    %30 = vector.load %arg11[%c0_28, %c0_29, %c0_30, %c0_31] : memref<1x1x3x32xf32, #tpu.memory_space<vmem>>, vector<1x1x3x32xf32>
    %31 = vector.shape_cast %30 : vector<1x1x3x32xf32> to vector<3x32xf32>
    %32 = vector.shape_cast %2 : vector<3x32xf32> to vector<1x1x3x32xf32>
    tpu.vector_store %arg11[%c0_28, %c0_29, %c0_30, %c0_31], %32 {strides = array<i32>} : memref<1x1x3x32xf32, #tpu.memory_space<vmem>>, vector<1x1x3x32xf32>,
    %33 = tpu.concatenate %10, %14, %1, %2 in 1 : vector<3x64xf32>, vector<3x32xf32>, vector<3x64xf32>, vector<3x32xf32> -> vector<3x192xf32>
    %c0_32 = arith.constant 0 : index
    %c0_33 = arith.constant 0 : index
    %c0_34 = arith.constant 0 : index
    %c0_35 = arith.constant 0 : index
    %34 = vector.load %arg5[%c0_32, %c0_33, %c0_34, %c0_35] : memref<1x1x3x192xf32, #tpu.memory_space<vmem>>, vector<1x1x3x192xf32>
    %35 = vector.shape_cast %34 : vector<1x1x3x192xf32> to vector<3x192xf32>
    %36 = vector.shape_cast %33 : vector<3x192xf32> to vector<1x1x3x192xf32>
    tpu.vector_store %arg5[%c0_32, %c0_33, %c0_34, %c0_35], %36 {strides = array<i32>} : memref<1x1x3x192xf32, #tpu.memory_space<vmem>>, vector<1x1x3x192xf32>,
    return
  }
  func.func @transform_0(%arg0: i32, %arg1: i32) -> (i32, i32) {
    %c0_i32 = arith.constant 0 : i32
    %c0_i32_0 = arith.constant 0 : i32
    %c0_i32_1 = arith.constant 0 : i32
    return %c0_i32, %c0_i32_0 : i32, i32
  }
  func.func @transform_1(%arg0: i32, %arg1: i32) -> (i32, i32) {
    %c0_i32 = arith.constant 0 : i32
    %c0_i32_0 = arith.constant 0 : i32
    %c0_i32_1 = arith.constant 0 : i32
    return %c0_i32, %c0_i32_0 : i32, i32
  }
  func.func @transform_2(%arg0: i32, %arg1: i32) -> (i32, i32) {
    %c0_i32 = arith.constant 0 : i32
    %c0_i32_0 = arith.constant 0 : i32
    %c0_i32_1 = arith.constant 0 : i32
    return %c0_i32, %c0_i32_0 : i32, i32
  }
  func.func @transform_3(%arg0: i32, %arg1: i32) -> (i32, i32, i32, i32) {
    %c0_i32 = arith.constant 0 : i32
    %c0_i32_0 = arith.constant 0 : i32
    %c0_i32_1 = arith.constant 0 : i32
    return %arg0, %arg1, %c0_i32, %c0_i32_0 : i32, i32, i32, i32
  }
  func.func @transform_4(%arg0: i32, %arg1: i32) -> (i32, i32, i32, i32) {
    %c0_i32 = arith.constant 0 : i32
    %c0_i32_0 = arith.constant 0 : i32
    %c0_i32_1 = arith.constant 0 : i32
    return %arg0, %arg1, %c0_i32, %c0_i32_0 : i32, i32, i32, i32
  }
  func.func @transform_5(%arg0: i32, %arg1: i32) -> (i32, i32, i32, i32) {
    %c0_i32 = arith.constant 0 : i32
    %c0_i32_0 = arith.constant 0 : i32
    %c0_i32_1 = arith.constant 0 : i32
    return %arg0, %arg1, %c0_i32, %c0_i32_0 : i32, i32, i32, i32
  }
  func.func @transform_6(%arg0: i32, %arg1: i32) -> (i32, i32, i32, i32) {
    %c0_i32 = arith.constant 0 : i32
    %c0_i32_0 = arith.constant 0 : i32
    %c0_i32_1 = arith.constant 0 : i32
    return %arg0, %arg1, %c0_i32, %c0_i32_0 : i32, i32, i32, i32
  }
  func.func @transform_7(%arg0: i32, %arg1: i32) -> (i32, i32, i32, i32) {
    %c0_i32 = arith.constant 0 : i32
    %c0_i32_0 = arith.constant 0 : i32
    %c0_i32_1 = arith.constant 0 : i32
    return %arg0, %arg1, %c0_i32, %c0_i32_0 : i32, i32, i32, i32
  }
  func.func @transform_8(%arg0: i32, %arg1: i32) -> (i32, i32, i32, i32) {
    %c0_i32 = arith.constant 0 : i32
    %c0_i32_0 = arith.constant 0 : i32
    %c0_i32_1 = arith.constant 0 : i32
    return %arg0, %arg1, %c0_i32, %c0_i32_0 : i32, i32, i32, i32
  }
  func.func @transform_9(%arg0: i32, %arg1: i32) -> (i32, i32, i32, i32) {
    %c0_i32 = arith.constant 0 : i32
    %c0_i32_0 = arith.constant 0 : i32
    %c0_i32_1 = arith.constant 0 : i32
    return %arg0, %arg1, %c0_i32, %c0_i32_0 : i32, i32, i32, i32
  }
}

module attributes {stable_mosaic.version = 11 : i64} {
  func.func @_feat_encode_kernel(%arg0: i32, %arg1: memref<3x49x32xf32, #tpu.memory_space<vmem>>, %arg2: memref<3x49x64xf32, #tpu.memory_space<vmem>>, %arg3: memref<3x5xf32, #tpu.memory_space<vmem>>, %arg4: memref<1x32xf32, #tpu.memory_space<vmem>>, %arg5: memref<1x64xf32, #tpu.memory_space<vmem>>, %arg6: memref<1x5xf32, #tpu.memory_space<vmem>>, %arg7: memref<5x32xf32, #tpu.memory_space<vmem>>, %arg8: memref<1x32xf32, #tpu.memory_space<vmem>>, %arg9: memref<3x32xf32, #tpu.memory_space<vmem>>, %arg10: memref<3x64xf32, #tpu.memory_space<vmem>>, %arg11: memref<3x32xf32, #tpu.memory_space<vmem>>) attributes {dimension_semantics = [#tpu.dimension_semantics<parallel>], iteration_bounds = array<i64: 1>, scalar_prefetch = 0 : i64, scratch_operands = 0 : i64, tpu.core_type = #tpu.core_type<tc>, window_params = [{transform_indices = @transform_0, window_bounds = array<i64: 3, 49, 32>}, {transform_indices = @transform_1, window_bounds = array<i64: 3, 49, 64>}, {transform_indices = @transform_2, window_bounds = array<i64: 3, 5>}, {pipeline_mode = #tpu.pipeline_mode<synchronous>, transform_indices = @transform_3, window_bounds = array<i64: 1, 32>}, {pipeline_mode = #tpu.pipeline_mode<synchronous>, transform_indices = @transform_4, window_bounds = array<i64: 1, 64>}, {pipeline_mode = #tpu.pipeline_mode<synchronous>, transform_indices = @transform_5, window_bounds = array<i64: 1, 5>}, {pipeline_mode = #tpu.pipeline_mode<synchronous>, transform_indices = @transform_6, window_bounds = array<i64: 5, 32>}, {pipeline_mode = #tpu.pipeline_mode<synchronous>, transform_indices = @transform_7, window_bounds = array<i64: 1, 32>}, {transform_indices = @transform_8, window_bounds = array<i64: 3, 32>}, {transform_indices = @transform_9, window_bounds = array<i64: 3, 64>}, {transform_indices = @transform_10, window_bounds = array<i64: 3, 32>}]} {
    %c0 = arith.constant 0 : index
    %c0_0 = arith.constant 0 : index
    %c0_1 = arith.constant 0 : index
    %0 = vector.load %arg1[%c0, %c0_0, %c0_1] : memref<3x49x32xf32, #tpu.memory_space<vmem>>, vector<3x49x32xf32>
    %1 = arith.mulf %0, %0 : vector<3x49x32xf32>
    %cst = arith.constant dense<0.000000e+00> : vector<3x49xf32>
    %2 = vector.multi_reduction <add>, %1, %cst [2] : vector<3x49x32xf32> to vector<3x49xf32>
    %3 = vector.shape_cast %2 : vector<3x49xf32> to vector<3x49x1xf32>
    %cst_2 = arith.constant 1.000000e-24 : f32
    %4 = vector.broadcast %cst_2 : f32 to vector<3x49x1xf32>
    %5 = arith.maximumf %3, %4 : vector<3x49x1xf32>
    %6 = math.rsqrt %5 : vector<3x49x1xf32>
    %7 = vector.broadcast %6 : vector<3x49x1xf32> to vector<3x49x32xf32>
    %8 = arith.mulf %0, %7 : vector<3x49x32xf32>
    %cst_3 = arith.constant dense<0.000000e+00> : vector<3x32xf32>
    %9 = vector.multi_reduction <add>, %8, %cst_3 [1] : vector<3x49x32xf32> to vector<3x32xf32>
    %cst_4 = arith.constant 4.900000e+01 : f32
    %10 = vector.broadcast %cst_4 : f32 to vector<3x32xf32>
    %11 = arith.divf %9, %10 : vector<3x32xf32>
    %c0_5 = arith.constant 0 : index
    %c0_6 = arith.constant 0 : index
    %12 = vector.load %arg4[%c0_5, %c0_6] : memref<1x32xf32, #tpu.memory_space<vmem>>, vector<1x32xf32>
    %13 = vector.broadcast %12 : vector<1x32xf32> to vector<3x32xf32>
    %14 = arith.mulf %11, %13 : vector<3x32xf32>
    %c0_7 = arith.constant 0 : index
    %c0_8 = arith.constant 0 : index
    %15 = vector.load %arg9[%c0_7, %c0_8] : memref<3x32xf32, #tpu.memory_space<vmem>>, vector<3x32xf32>
    tpu.vector_store %arg9[%c0_7, %c0_8], %14 {strides = array<i32>} : memref<3x32xf32, #tpu.memory_space<vmem>>, vector<3x32xf32>,
    %c0_9 = arith.constant 0 : index
    %c0_10 = arith.constant 0 : index
    %c0_11 = arith.constant 0 : index
    %16 = vector.load %arg2[%c0_9, %c0_10, %c0_11] : memref<3x49x64xf32, #tpu.memory_space<vmem>>, vector<3x49x64xf32>
    %17 = arith.mulf %16, %16 : vector<3x49x64xf32>
    %cst_12 = arith.constant dense<0.000000e+00> : vector<3x49xf32>
    %18 = vector.multi_reduction <add>, %17, %cst_12 [2] : vector<3x49x64xf32> to vector<3x49xf32>
    %19 = vector.shape_cast %18 : vector<3x49xf32> to vector<3x49x1xf32>
    %cst_13 = arith.constant 1.000000e-24 : f32
    %20 = vector.broadcast %cst_13 : f32 to vector<3x49x1xf32>
    %21 = arith.maximumf %19, %20 : vector<3x49x1xf32>
    %22 = math.rsqrt %21 : vector<3x49x1xf32>
    %23 = vector.broadcast %22 : vector<3x49x1xf32> to vector<3x49x64xf32>
    %24 = arith.mulf %16, %23 : vector<3x49x64xf32>
    %cst_14 = arith.constant dense<0.000000e+00> : vector<3x64xf32>
    %25 = vector.multi_reduction <add>, %24, %cst_14 [1] : vector<3x49x64xf32> to vector<3x64xf32>
    %cst_15 = arith.constant 4.900000e+01 : f32
    %26 = vector.broadcast %cst_15 : f32 to vector<3x64xf32>
    %27 = arith.divf %25, %26 : vector<3x64xf32>
    %c0_16 = arith.constant 0 : index
    %c0_17 = arith.constant 0 : index
    %28 = vector.load %arg5[%c0_16, %c0_17] : memref<1x64xf32, #tpu.memory_space<vmem>>, vector<1x64xf32>
    %29 = vector.broadcast %28 : vector<1x64xf32> to vector<3x64xf32>
    %30 = arith.mulf %27, %29 : vector<3x64xf32>
    %c0_18 = arith.constant 0 : index
    %c0_19 = arith.constant 0 : index
    %31 = vector.load %arg10[%c0_18, %c0_19] : memref<3x64xf32, #tpu.memory_space<vmem>>, vector<3x64xf32>
    tpu.vector_store %arg10[%c0_18, %c0_19], %30 {strides = array<i32>} : memref<3x64xf32, #tpu.memory_space<vmem>>, vector<3x64xf32>,
    %c0_20 = arith.constant 0 : index
    %c0_21 = arith.constant 0 : index
    %32 = vector.load %arg3[%c0_20, %c0_21] : memref<3x5xf32, #tpu.memory_space<vmem>>, vector<3x5xf32>
    %33 = arith.mulf %32, %32 : vector<3x5xf32>
    %cst_22 = arith.constant dense<0.000000e+00> : vector<3xf32>
    %34 = vector.multi_reduction <add>, %33, %cst_22 [1] : vector<3x5xf32> to vector<3xf32>
    %35 = vector.shape_cast %34 : vector<3xf32> to vector<3x1xf32>
    %cst_23 = arith.constant 1.000000e-24 : f32
    %36 = vector.broadcast %cst_23 : f32 to vector<3x1xf32>
    %37 = arith.maximumf %35, %36 : vector<3x1xf32>
    %38 = math.rsqrt %37 : vector<3x1xf32>
    %39 = vector.broadcast %38 : vector<3x1xf32> to vector<3x5xf32>
    %40 = arith.mulf %32, %39 : vector<3x5xf32>
    %c0_24 = arith.constant 0 : index
    %c0_25 = arith.constant 0 : index
    %41 = vector.load %arg6[%c0_24, %c0_25] : memref<1x5xf32, #tpu.memory_space<vmem>>, vector<1x5xf32>
    %42 = vector.broadcast %41 : vector<1x5xf32> to vector<3x5xf32>
    %43 = arith.mulf %40, %42 : vector<3x5xf32>
    %c0_26 = arith.constant 0 : index
    %c0_27 = arith.constant 0 : index
    %44 = vector.load %arg7[%c0_26, %c0_27] : memref<5x32xf32, #tpu.memory_space<vmem>>, vector<5x32xf32>
    %c0_28 = arith.constant 0 : index
    %c0_29 = arith.constant 0 : index
    %45 = vector.load %arg8[%c0_28, %c0_29] : memref<1x32xf32, #tpu.memory_space<vmem>>, vector<1x32xf32>
    %46 = vector.shape_cast %45 : vector<1x32xf32> to vector<1x32xf32>
    %47 = vector.broadcast %46 : vector<1x32xf32> to vector<3x32xf32>
    %48 = vector.extract_strided_slice %43 {offsets = [0, 0], sizes = [3, 1], strides = [1, 1]} : vector<3x5xf32> to vector<3x1xf32>
    %49 = vector.extract_strided_slice %44 {offsets = [0, 0], sizes = [1, 32], strides = [1, 1]} : vector<5x32xf32> to vector<1x32xf32>
    %50 = vector.broadcast %48 : vector<3x1xf32> to vector<3x32xf32>
    %51 = vector.broadcast %49 : vector<1x32xf32> to vector<3x32xf32>
    %52 = arith.mulf %50, %51 : vector<3x32xf32>
    %53 = arith.addf %47, %52 : vector<3x32xf32>
    %54 = vector.extract_strided_slice %43 {offsets = [0, 1], sizes = [3, 1], strides = [1, 1]} : vector<3x5xf32> to vector<3x1xf32>
    %55 = vector.extract_strided_slice %44 {offsets = [1, 0], sizes = [1, 32], strides = [1, 1]} : vector<5x32xf32> to vector<1x32xf32>
    %56 = vector.broadcast %54 : vector<3x1xf32> to vector<3x32xf32>
    %57 = vector.broadcast %55 : vector<1x32xf32> to vector<3x32xf32>
    %58 = arith.mulf %56, %57 : vector<3x32xf32>
    %59 = arith.addf %53, %58 : vector<3x32xf32>
    %60 = vector.extract_strided_slice %43 {offsets = [0, 2], sizes = [3, 1], strides = [1, 1]} : vector<3x5xf32> to vector<3x1xf32>
    %61 = vector.extract_strided_slice %44 {offsets = [2, 0], sizes = [1, 32], strides = [1, 1]} : vector<5x32xf32> to vector<1x32xf32>
    %62 = vector.broadcast %60 : vector<3x1xf32> to vector<3x32xf32>
    %63 = vector.broadcast %61 : vector<1x32xf32> to vector<3x32xf32>
    %64 = arith.mulf %62, %63 : vector<3x32xf32>
    %65 = arith.addf %59, %64 : vector<3x32xf32>
    %66 = vector.extract_strided_slice %43 {offsets = [0, 3], sizes = [3, 1], strides = [1, 1]} : vector<3x5xf32> to vector<3x1xf32>
    %67 = vector.extract_strided_slice %44 {offsets = [3, 0], sizes = [1, 32], strides = [1, 1]} : vector<5x32xf32> to vector<1x32xf32>
    %68 = vector.broadcast %66 : vector<3x1xf32> to vector<3x32xf32>
    %69 = vector.broadcast %67 : vector<1x32xf32> to vector<3x32xf32>
    %70 = arith.mulf %68, %69 : vector<3x32xf32>
    %71 = arith.addf %65, %70 : vector<3x32xf32>
    %72 = vector.extract_strided_slice %43 {offsets = [0, 4], sizes = [3, 1], strides = [1, 1]} : vector<3x5xf32> to vector<3x1xf32>
    %73 = vector.extract_strided_slice %44 {offsets = [4, 0], sizes = [1, 32], strides = [1, 1]} : vector<5x32xf32> to vector<1x32xf32>
    %74 = vector.broadcast %72 : vector<3x1xf32> to vector<3x32xf32>
    %75 = vector.broadcast %73 : vector<1x32xf32> to vector<3x32xf32>
    %76 = arith.mulf %74, %75 : vector<3x32xf32>
    %77 = arith.addf %71, %76 : vector<3x32xf32>
    %c0_30 = arith.constant 0 : index
    %c0_31 = arith.constant 0 : index
    %78 = vector.load %arg11[%c0_30, %c0_31] : memref<3x32xf32, #tpu.memory_space<vmem>>, vector<3x32xf32>
    tpu.vector_store %arg11[%c0_30, %c0_31], %77 {strides = array<i32>} : memref<3x32xf32, #tpu.memory_space<vmem>>, vector<3x32xf32>,
    return
  }
  func.func @transform_0(%arg0: i32) -> (i32, i32, i32) {
    %c0_i32 = arith.constant 0 : i32
    %c0_i32_0 = arith.constant 0 : i32
    %c0_i32_1 = arith.constant 0 : i32
    return %arg0, %c0_i32, %c0_i32_0 : i32, i32, i32
  }
  func.func @transform_1(%arg0: i32) -> (i32, i32, i32) {
    %c0_i32 = arith.constant 0 : i32
    %c0_i32_0 = arith.constant 0 : i32
    %c0_i32_1 = arith.constant 0 : i32
    return %arg0, %c0_i32, %c0_i32_0 : i32, i32, i32
  }
  func.func @transform_2(%arg0: i32) -> (i32, i32) {
    %c0_i32 = arith.constant 0 : i32
    %c0_i32_0 = arith.constant 0 : i32
    return %arg0, %c0_i32 : i32, i32
  }
  func.func @transform_3(%arg0: i32) -> (i32, i32) {
    %c0_i32 = arith.constant 0 : i32
    %c0_i32_0 = arith.constant 0 : i32
    %c0_i32_1 = arith.constant 0 : i32
    return %c0_i32, %c0_i32_0 : i32, i32
  }
  func.func @transform_4(%arg0: i32) -> (i32, i32) {
    %c0_i32 = arith.constant 0 : i32
    %c0_i32_0 = arith.constant 0 : i32
    %c0_i32_1 = arith.constant 0 : i32
    return %c0_i32, %c0_i32_0 : i32, i32
  }
  func.func @transform_5(%arg0: i32) -> (i32, i32) {
    %c0_i32 = arith.constant 0 : i32
    %c0_i32_0 = arith.constant 0 : i32
    %c0_i32_1 = arith.constant 0 : i32
    return %c0_i32, %c0_i32_0 : i32, i32
  }
  func.func @transform_6(%arg0: i32) -> (i32, i32) {
    %c0_i32 = arith.constant 0 : i32
    %c0_i32_0 = arith.constant 0 : i32
    %c0_i32_1 = arith.constant 0 : i32
    return %c0_i32, %c0_i32_0 : i32, i32
  }
  func.func @transform_7(%arg0: i32) -> (i32, i32) {
    %c0_i32 = arith.constant 0 : i32
    %c0_i32_0 = arith.constant 0 : i32
    %c0_i32_1 = arith.constant 0 : i32
    return %c0_i32, %c0_i32_0 : i32, i32
  }
  func.func @transform_8(%arg0: i32) -> (i32, i32) {
    %c0_i32 = arith.constant 0 : i32
    %c0_i32_0 = arith.constant 0 : i32
    return %arg0, %c0_i32 : i32, i32
  }
  func.func @transform_9(%arg0: i32) -> (i32, i32) {
    %c0_i32 = arith.constant 0 : i32
    %c0_i32_0 = arith.constant 0 : i32
    return %arg0, %c0_i32 : i32, i32
  }
  func.func @transform_10(%arg0: i32) -> (i32, i32) {
    %c0_i32 = arith.constant 0 : i32
    %c0_i32_0 = arith.constant 0 : i32
    return %arg0, %c0_i32 : i32, i32
  }
}

</mosaic_0001>

<bundles_post_ra>
// kernel: pair_encoder_forward.3
= control target key start
LH: loop header
LB: loop body
LE: loop exit
PB: predicated region body
PF: predicated region fallthrough
CT: control target
= control target key end

     0   :  { %s1954_s0 = inlined_call_operand.hbm [shape: f32[3,32], index: 0, kind: input, shape index: {}]   ;;  %s1955_s1 = inlined_call_operand.hbm [shape: f32[3,64], index: 1, kind: input, shape index: {}]   ;;  %s1956_s2 = inlined_call_operand.hbm [shape: f32[3,32], index: 2, kind: input, shape index: {}]   ;;  %s1957_s3 = inlined_call_operand.hbm [shape: f32[2,3,3,192], index: 3, kind: output, shape index: {0}]   ;;  %s1958_s4 = inlined_call_operand.hbm [shape: f32[2,3,3,32], index: 4, kind: output, shape index: {1}]   ;;  %s1959_s5 = inlined_call_operand.hbm [shape: f32[2,3,3,64], index: 5, kind: output, shape index: {2}]   ;;  %s1960_s6 = inlined_call_operand.hbm [shape: f32[2,3,3,32], index: 6, kind: output, shape index: {3}]   ;;  %s1961_s7 = inlined_call_operand.hbm [shape: f32[2,3,3,32], index: 7, kind: output, shape index: {4}]   ;;  %s1962_s8 = inlined_call_operand.hbm [shape: f32[2,3,3,64], index: 8, kind: output, shape index: {5}]   ;;  %s1963_s9 = inlined_call_operand.hbm [shape: f32[2,3,3,32], index: 9, kind: output, shape index: {6}]  }
   0x1   :  { %1980 = sst [smem:[#allocation32_spill]] %s1954_s0 }
   0x2   :  { %1981 = sst [smem:[#allocation33_spill]] %s1955_s1 }
   0x3   :  { %15 = vsyncpa [#allocation3], 0 }
   0x4   :  { %16 = vsyncpa [#allocation6], 0 }
   0x5   :  { %17 = vsyncpa [#allocation4], 0 }
   0x6   :  { %19 = vsyncpa [#allocation4 + $0x1], 0 }
   0x7   :  { %20 = vsyncpa [#allocation10], 0 }
   0x8   :  { %22 = vsyncpa [#allocation10 + $0x1], 0 }
   0x9   :  { %23 = vsyncpa [#allocation13], 0 }
   0xa   :  { %25 = vsyncpa [#allocation13 + $0x1], 0 }
   0xb   :  { %26 = vsyncpa [#allocation16], 0 }
   0xc   :  { %28 = vsyncpa [#allocation16 + $0x1], 0  ;;  %s1519_s30 = smov 0   ;;  %s1521_s10 = smov 0  }
   0xd   :  { %s1523_s11 = smov 0   ;;  %s1525_s12 = smov 0  }
   0xe   :  { %s1527_s13 = smov 0   ;;  %s1529_s14 = smov 0  }
   0xf   :  { %s1531_s15 = smov 0   ;;  %s1533_s16 = smov 0  }
  0x10 LB: > { %1982 = sst [smem:[#allocation24_spill]] %s1426_s30  ;;  %s1560_s17 = sadd.s32 4294967295, %s1454_s16   ;;  %s1454_s16 = sphi %s1533_s16, %s34_s16   ;;  %s1450_s15 = sphi %s1531_s15, %s2017_s15   ;;  %s1446_s14 = sphi %s1529_s14, %s2016_s14   ;;  %s1442_s13 = sphi %s1527_s13, %s2015_s13   ;;  %s1438_s12 = sphi %s1525_s12, %s2014_s12   ;;  %s1434_s11 = sphi %s1523_s11, %s2013_s11   ;;  %s1430_s10 = sphi %s1521_s10, %s2019_s10   ;;  %s1426_s30 = sphi %s1519_s30, %s2018_s30  }
  0x11   : > { %1983 = sst [smem:[#allocation25_spill]] %s1434_s11  ;;  %s1964_s18 = sadd.s32 4294967294, %s1454_s16  }
  0x12   : > { %1984 = sst [smem:[#allocation26_spill]] %s1446_s14  ;;  %s43_s19 = sadd.s32 1, %s1446_s14 }
  0x13   : > { %1985 = sst [smem:[#allocation27_spill]] %s1450_s15  ;;  %s46_s20 = sadd.s32 1, %s1450_s15 }
  0x14   : > { %p44_p0 = scmp.ge.s32.totalorder %s43_s19, 3  ;;  %s118_s21 = sadd.s32 1, %s1434_s11 }
  0x15   : > { %p128_p1 = scmp.ne.s32.totalorder %s1434_s11, %s1430_s10  ;;  %p129_p2 = scmp.eq.s32.totalorder %s1560_s17, 5 }
  0x16   : > { %s2021_s19 = smov (%p44_p0, %s43_s19), 0  ;;  %s2023_s20 = smov (!%p44_p0, %s46_s20), %s1450_s15 }
  0x17   : > { %1986 = sst [smem:[#allocation28_spill]] %s2021_s19  ;;  %s114_s22 = ssub.s32 %s1446_s14, %s2021_s19 }
  0x18   : > { %p1574_p3 = por %p129_p2, %p128_p1  ;;  %p48_p4 = scmp.ge.s32.totalorder %s2023_s20, 2 }
  0x19   : > { %p134_p5 = scmp.ne.s32.totalorder %s1430_s10, %s1426_s30  ;;  %p135_p6 = scmp.eq.s32.totalorder %s1964_s18, 5 }
  0x1a   : > { %s1987_s23 = scalar_select %p1574_p3, 1, 0 }
  0x1b   : > { %p911_p7 = scmp.ge.s32.totalorder %s1454_s16, 1  ;;  %s2025_s20 = smov (%p48_p4, %s2023_s20), 0 }
  0x1c   : > { %1988 = sst [smem:[#allocation29_spill]] %s2025_s20  ;;  %p1585_p8 = por %p135_p6, %p134_p5 }
  0x1d   : > { %p310_p9 = scmp.lt.s32.totalorder %s1454_s16, 7  ;;  %s113_s25 = ssub.s32 %s1450_s15, %s2025_s20 }
  0x1e   : > { %s1989_s24 = scalar_select %p1585_p8, 1, 0 }
  0x1f   : > { %s115_s26 = sor.u32 %s114_s22, %s113_s25  ;;  %p1592_p10 = pnand %p911_p7, %p310_p9 }
  0x20   : > { %1990 = sst [smem:[#allocation30_spill]] %s1989_s24  ;;  %p116_p11 = scmp.eq.s32.totalorder %s115_s26, 0 }
  0x21   : > { %s1991_s27 = scalar_select %p1592_p10, 1, 0 }
  0x22   : > { %p1969_p12 = scmp.eq.s32.totalorder %s1560_s17, 0  ;;  %p979_p13 = pneg %p1592_p10 }
  0x23   : > { %s1600_s28 = scalar_select %p116_p11, %s1434_s11, %s118_s21  }
  0x24   : > { %p1604_p0 = pnand %p1969_p12, %p979_p13  ;;  %s1456_s18 = smov [#allocation5]  }
  0x25   : > { %1992 = sst [smem:[#allocation31_spill]] %s1600_s28  ;;  %s334_s20 = sshll.u32 %s1456_s18, 4  ;;  %s335_s20 = int_to_ptr.vmem [resolvable:$true] %s334_s20 }
  0x26   : > { %s1994_s1 = sld [smem:[#allocation33_spill]]  ;;  %p1616_p2 = pneg %p1604_p0 }
  0x2c   : > { %s1088_s19 = scalar_lea.hbm %s1994_s1, 64 }
  0x2d   : > { %p1089_p1 = scmp.ne.s32.totalorder %s1994_s1, %s1088_s19  ;;  %p1095_p6 = scmp.lt.u32.totalorder %s1088_s19, %s1994_s1 }
  0x2f   : > { %p1091_p4 = pnand %p1616_p2, %p1089_p1 }
  0x31   : > { %p1092_p5 = pneg %p1091_p4 }
  0x33   : > { %p1097_p7 = pnand %p1095_p6, %p1092_p5 }
  0x35   : > { %1100 = shalt.err (!%p1097_p7)
}
  0x36   : > { %s1101_s22 = scalar_lea.vmem %s335_s20, 64  ;;  %p1109_p12 = scmp.lt.s32.totalorder %s335_s20, %s335_s20 }
  0x37   : > { %p1102_p9 = scmp.ne.s32.totalorder %s335_s20, %s1101_s22  ;;  %p1110_p8 = scmp.lt.s32.totalorder %s1101_s22, %s1101_s22 }
  0x39   : > { %p1104_p11 = pnand %p1102_p9, %p1616_p2  ;;  %p1111_p3 = por %p1110_p8, %p1109_p12 }
  0x3b   : > { %p1105_p13 = pneg %p1104_p11 }
  0x3d   : > { %p1112_p10 = pnand %p1111_p3, %p1105_p13 }
  0x3f   : > { %1115 = shalt.err (!%p1112_p10)
}
  0x40   : > { %985 = dma.hbm_to_vmem [thread:$0]  (!%p1604_p0), %s1994_s1, 64, %s335_s20, [#allocation6]  }
  0x41   : > { %s1457_s14 = smov [#allocation2]   ;;  %s1458_s26 = smov [#allocation7]  }
  0x42   : > { %s323_s19 = sshll.u32 %s1457_s14, 4  ;;  %s345_s18 = sshll.u32 %s1458_s26, 4  ;;  %s324_s19 = int_to_ptr.vmem [resolvable:$true] %s323_s19  ;;  %s1632_s18 = int_to_ptr.vmem [resolvable:$true] %s345_s18 }
  0x43   : > { %s1996_s0 = sld [smem:[#allocation32_spill]] }
  0x49   : > { %s1116_s22 = scalar_lea.hbm %s1996_s0, 64 }
  0x4a   : > { %p1117_p3 = scmp.ne.s32.totalorder %s1996_s0, %s1116_s22  ;;  %p1123_p12 = scmp.lt.u32.totalorder %s1116_s22, %s1996_s0 }
  0x4c   : > { %p1119_p8 = pnand %p1117_p3, %p1616_p2 }
  0x4e   : > { %p1120_p10 = pneg %p1119_p8 }
  0x50   : > { %p1125_p1 = pnand %p1123_p12, %p1120_p10 }
  0x52   : > { %1128 = shalt.err (!%p1125_p1)
}
  0x53   : > { %s1129_s25 = scalar_lea.vmem %s324_s19, 64  ;;  %p1137_p7 = scmp.lt.s32.totalorder %s324_s19, %s324_s19 }
  0x54   : > { %p1130_p4 = scmp.ne.s32.totalorder %s324_s19, %s1129_s25  ;;  %p1138_p9 = scmp.lt.s32.totalorder %s1129_s25, %s1129_s25 }
  0x56   : > { %p1132_p5 = pnand %p1130_p4, %p1616_p2  ;;  %p1139_p11 = por %p1138_p9, %p1137_p7 }
  0x58   : > { %p1133_p6 = pneg %p1132_p5 }
  0x5a   : > { %p1140_p13 = pnand %p1139_p11, %p1133_p6 }
  0x5c   : > { %1143 = shalt.err (!%p1140_p13)
}
  0x5d   : > { %982 = dma.hbm_to_vmem [thread:$0]  (!%p1604_p0), %s1996_s0, 64, %s324_s19, [#allocation3]  }
  0x5e   : > { %s1144_s14 = scalar_lea.hbm %s1956_s2, 64 }
  0x5f   : > { %p1145_p3 = scmp.ne.s32.totalorder %s1956_s2, %s1144_s14  ;;  %p1151_p12 = scmp.lt.u32.totalorder %s1144_s14, %s1956_s2 }
  0x61   : > { %p1147_p8 = pnand %p1145_p3, %p1616_p2 }
  0x63   : > { %p1148_p10 = pneg %p1147_p8 }
  0x65   : > { %p1153_p1 = pnand %p1151_p12, %p1148_p10 }
  0x67   : > { %1156 = shalt.err (!%p1153_p1)
}
  0x68   : > { %s1157_s19 = scalar_lea.vmem %s1632_s18, 64  ;;  %p1165_p7 = scmp.lt.s32.totalorder %s1632_s18, %s1632_s18 }
  0x69   : > { %p1158_p4 = scmp.ne.s32.totalorder %s1632_s18, %s1157_s19  ;;  %p1166_p9 = scmp.lt.s32.totalorder %s1157_s19, %s1157_s19 }
  0x6b   : > { %p1160_p5 = pnand %p1158_p4, %p1616_p2  ;;  %p1167_p11 = por %p1166_p9, %p1165_p7 }
  0x6d   : > { %p1161_p6 = pneg %p1160_p5 }
  0x6f   : > { %p1168_p13 = pnand %p1167_p11, %p1161_p6 }
  0x71   : > { %1171 = shalt.err (!%p1168_p13)
}
  0x72   : > { %988 = dma.hbm_to_vmem [thread:$0]  (!%p1604_p0), %s1956_s2, 64, %s1632_s18, [#allocation6]  }
  0x73   : > { %p1997_p3 = scmp.ne.s32.totalorder %s1991_s27, 0 }
  0x74   : > { %p1998_p8 = scmp.eq.s32.totalorder (!%p1997_p3), %s1560_s17, 0 }
  0x75   : > { %358 = sbr.rel (%p1997_p3) target bundleno = 310 (0x136), region = 32 }
  0x7c   : > { %1401 = dma.done.wait (%p1998_p8), [#allocation3], 64   ;;  %p1999_p2 = pmov %p1998_p8 }
  0x7e   : > { %1403 = vsyncadd (%p1999_p2), [#allocation3], 4294967232  ;;  %p2000_p10 = pmov %p1999_p2 }
  0x7f   : > { %p2001_p12 = pmov %p1999_p2 }
  0x80   : > { %1405 = dma.done.wait (%p2000_p10), [#allocation6], 128  }
  0x81   : > { %1407 = vsyncadd (%p2001_p12), [#allocation6], 4294967168  ;;  %s1686_s29 = sand.u32 1, %s1430_s10   ;;  %vm448_vm0 = vcmask 256000   ;;  %vm450_vm1 = vcmask 518144   ;;  %s1692_s21 = sand.u32 1, %s1560_s17  }
  0x82   : > { %s1689_s27 = sshll.u32 %s1686_s29, 2  ;;  %s947_s18 = smul.u32 3, %s1442_s13  ;;  %v429_v1 = vld [vmem:[#allocation7] sm:$0x7]  ;;  %v428_v4 = vld [vmem:[#allocation5] sm:$0x7] }
  0x83   : > { %s438_s11 = scalar_lea.vmem [#allocation7], %s1438_s12  ;;  %s1459_s24 = smov 64  }
  0x84   : > { %v927_v0 = vld [vmem:[%s438_s11] ss:$0 sm:$0xff]  ;;  %s405_s28 = scalar_lea.vmem [#allocation12], %s1689_s27  ;;  %s1460_s14 = smov 32  }
  0x85   : > { %457 = vrot.lane.b32.xlu0 %v927_v0, %s1459_s24  ;;  %452 = vst.msk [vmem:[%s405_s28] sm:$0x7] %vm448_vm0, %v927_v0  ;;  %465 = vrot.lane.b32.xlu1 %v429_v1, %s1460_s14  ;;  %s1975_s26 = scalar_lea.vmem [#allocation17], %s1689_s27  ;;  %s432_s17 = scalar_lea.vmem [#allocation5], %s1438_s12 }
  0x86   : > { %455 = vst.msk [vmem:[%s1975_s26] sm:$0x7] %vm448_vm0, %v429_v1  ;;  %v1705_v2 = vld [vmem:[%s432_s17] ss:$0 sm:$0xff]  ;;  %s430_s22 = scalar_lea.vmem [#allocation2], %s1438_s12  ;;  %s540_s15 = sadd.s32 %s1438_s12, %s947_s18 }
  0x87   : > { %v928_v3 = vld [vmem:[%s430_s22] ss:$0 sm:$0xff]  ;;  %s1976_s20 = scalar_lea.vmem [#allocation11], %s1689_s27  ;;  %s391_s19 = scalar_lea.vmem [#allocation9], %s1689_s27 }
  0x88   : > { %451 = vst.msk [vmem:[%s1976_s20] sm:$0x7] %vm450_vm1, %v1705_v2  ;;  %s1716_s25 = sshll.u32 %s540_s15, 6  ;;  %s544_s30 = sshll.u32 %s391_s19, 4  ;;  %s545_s30 = int_to_ptr.vmem [resolvable:$true] %s544_s30 }
  0x89   : > { %449 = vst.msk [vmem:[%s391_s19] sm:$0x7] %vm448_vm0, %v928_v3  ;;  %s1722_s14 = scalar_lea.hbm %s1958_s4, %s1716_s25  ;;  %s1977_s18 = scalar_lea.sflag [#allocation10], %s1692_s21 }
  0x8a   : > { %s1172_s17 = scalar_lea.vmem %s545_s30, 64  ;;  %p2002_p1 = scmp.ne.s32.totalorder %s1987_s23, 0 }
  0x8b   : > { %p1173_p0 = scmp.ne.s32.totalorder %s545_s30, %s1172_s17  ;;  %s1461_s22 = smov [#allocation9]  }
  0x8c   : > { %s1176_s26 = sshll.u32 %s1461_s22, 4  ;;  %s1177_s26 = int_to_ptr.vmem [resolvable:$false] %s1176_s26 }
  0x8d   : > { %p1174_p4 = pnand %p1173_p0, %p2002_p1  ;;  %s1178_s20 = scalar_lea.vmem %s1177_s26, 128 }
  0x8e   : > { %p1179_p6 = scmp.lt.s32.totalorder %s545_s30, %s1177_s26  ;;  %p1180_p7 = scmp.lt.s32.totalorder %s1178_s20, %s1172_s17 }
  0x8f   : > { %p1175_p5 = pneg %p1174_p4 }
  0x90   : > { %p1181_p9 = por %p1180_p7, %p1179_p6 }
  0x92   : > { %p1182_p11 = pnand %p1181_p9, %p1175_p5 }
  0x94   : > { %1185 = shalt.err (!%p1182_p11)
}
  0x95   : > { %s1186_s15 = scalar_lea.hbm %s1722_s14, 64  ;;  %s1190_s24 = scalar_lea.hbm %s1958_s4, 384 }
  0x96   : > { %p1187_p13 = scmp.ne.s32.totalorder %s1722_s14, %s1186_s15  ;;  %p1191_p2 = scmp.lt.u32.totalorder %s1722_s14, %s1958_s4 }
  0x97   : > { %p1192_p10 = scmp.lt.u32.totalorder %s1190_s24, %s1186_s15  ;;  %p1194_p0 = scmp.lt.u32.totalorder %s1186_s15, %s1722_s14 }
  0x98   : > { %p1188_p3 = pnand %p1187_p13, %p2002_p1 }
  0x99   : > { %p1193_p12 = por %p1192_p10, %p1191_p2 }
  0x9a   : > { %p1189_p8 = pneg %p1188_p3 }
  0x9b   : > { %p1195_p4 = por %p1194_p0, %p1193_p12 }
  0x9d   : > { %p1196_p5 = pnand %p1195_p4, %p1189_p8 }
  0x9f   : > { %1199 = shalt.err (!%p1196_p5)
}
  0xa0   : > { %966 = dma.vmem_to_hbm [thread:$0]  (%p2002_p1), %s545_s30, 64, %s1722_s14, %s1977_s18  }
  0xa1   : > { %s1462_s20 = smov 96   ;;  %s1748_s15 = scalar_lea.hbm %s1960_s6, %s1716_s25 }
  0xa2   : > { %461 = vrot.lane.b32.xlu0 %v428_v4, %s1462_s20  ;;  %s574_s11 = sshll.u32 %s405_s28, 4  ;;  %s419_s24 = scalar_lea.vmem [#allocation15], %s1689_s27  ;;  %s1752_s11 = int_to_ptr.vmem [resolvable:$true] %s574_s11 }
  0xa3   : > { %454 = vst.msk [vmem:[%s419_s24] sm:$0x7] %vm450_vm1, %v428_v4  ;;  %s1979_s22 = scalar_lea.sflag [#allocation13], %s1692_s21  ;;  %s1200_s30 = scalar_lea.vmem %s1752_s11, 64 }
  0xa4   : > { %p1201_p6 = scmp.ne.s32.totalorder %s1752_s11, %s1200_s30  ;;  %s1463_s14 = smov [#allocation12]  }
  0xa5   : > { %s1204_s26 = sshll.u32 %s1463_s14, 4  ;;  %s1205_s26 = int_to_ptr.vmem [resolvable:$false] %s1204_s26 }
  0xa6   : > { %p1202_p7 = pnand %p1201_p6, %p2002_p1  ;;  %s1206_s20 = scalar_lea.vmem %s1205_s26, 128 }
  0xa7   : > { %p1207_p11 = scmp.lt.s32.totalorder %s1752_s11, %s1205_s26  ;;  %p1208_p13 = scmp.lt.s32.totalorder %s1206_s20, %s1200_s30 }
  0xa8   : > { %p1203_p9 = pneg %p1202_p7 }
  0xa9   : > { %p1209_p3 = por %p1208_p13, %p1207_p11 }
  0xab   : > { %p1210_p8 = pnand %p1209_p3, %p1203_p9 }
  0xad   : > { %1213 = shalt.err (!%p1210_p8)
}
  0xae   : > { %s1214_s28 = scalar_lea.hbm %s1748_s15, 64  ;;  %s1218_s14 = scalar_lea.hbm %s1960_s6, 384 }
  0xaf   : > { %p1215_p2 = scmp.ne.s32.totalorder %s1748_s15, %s1214_s28  ;;  %p1219_p0 = scmp.lt.u32.totalorder %s1748_s15, %s1960_s6 }
  0xb0   : > { %p1220_p4 = scmp.lt.u32.totalorder %s1218_s14, %s1214_s28  ;;  %p1222_p6 = scmp.lt.u32.totalorder %s1214_s28, %s1748_s15 }
  0xb1   : > { %p1216_p10 = pnand %p1215_p2, %p2002_p1 }
  0xb2   : > { %p1221_p5 = por %p1220_p4, %p1219_p0 }
  0xb3   : > { %p1217_p12 = pneg %p1216_p10 }
  0xb4   : > { %p1223_p7 = por %p1222_p6, %p1221_p5 }
  0xb6   : > { %p1224_p9 = pnand %p1223_p7, %p1217_p12 }
  0xb8   : > { %1227 = shalt.err (!%p1224_p9)
}
  0xb9   : > { %968 = dma.vmem_to_hbm [thread:$0]  (%p2002_p1), %s1752_s11, 64, %s1748_s15, %s1979_s22  }
  0xba   : > { %s1786_s20 = scalar_lea.hbm %s1962_s8, %s1716_s25  ;;  %s604_s28 = sshll.u32 %s419_s24, 4  ;;  %s605_s28 = int_to_ptr.vmem [resolvable:$true] %s604_s28 }
  0xbb   : > { %s1978_s17 = scalar_lea.sflag [#allocation16], %s1692_s21  ;;  %s1228_s19 = scalar_lea.vmem %s605_s28, 64 }
  0xbc   : > { %p1229_p11 = scmp.ne.s32.totalorder %s605_s28, %s1228_s19  ;;  %s1464_s14 = smov [#allocation15]  }
  0xbd   : > { %s1232_s26 = sshll.u32 %s1464_s14, 4  ;;  %s1233_s26 = int_to_ptr.vmem [resolvable:$false] %s1232_s26 }
  0xbe   : > { %p1230_p13 = pnand %p1229_p11, %p2002_p1  ;;  %s1234_s0 = scalar_lea.vmem %s1233_s26, 128 }
  0xbf   : > { %p1235_p8 = scmp.lt.s32.totalorder %s605_s28, %s1233_s26  ;;  %p1236_p2 = scmp.lt.s32.totalorder %s1234_s0, %s1228_s19 }
  0xc0   : > { %p1231_p3 = pneg %p1230_p13 }
  0xc1   : > { %p1237_p10 = por %p1236_p2, %p1235_p8 }
  0xc3   : > { %p1238_p12 = pnand %p1237_p10, %p1231_p3 }
  0xc5   : > { %1241 = shalt.err (!%p1238_p12)
}
  0xc6   : > { %s1242_s15 = scalar_lea.hbm %s1786_s20, 64  ;;  %s1246_s30 = scalar_lea.hbm %s1962_s8, 384 }
  0xc7   : > { %p1243_p0 = scmp.ne.s32.totalorder %s1786_s20, %s1242_s15  ;;  %p1247_p6 = scmp.lt.u32.totalorder %s1786_s20, %s1962_s8 }
  0xc8   : > { %p1248_p7 = scmp.lt.u32.totalorder %s1246_s30, %s1242_s15  ;;  %p1250_p11 = scmp.lt.u32.totalorder %s1242_s15, %s1786_s20 }
  0xc9   : > { %p1244_p4 = pnand %p1243_p0, %p2002_p1 }
  0xca   : > { %p1249_p9 = por %p1248_p7, %p1247_p6 }
  0xcb   : > { %p1245_p5 = pneg %p1244_p4 }
  0xcc   : > { %p1251_p13 = por %p1250_p11, %p1249_p9 }
  0xce   : > { %p1252_p3 = pnand %p1251_p13, %p1245_p5 }
  0xd0   : > { %1255 = shalt.err (!%p1252_p3)
}
  0xd1   : > { %970 = dma.vmem_to_hbm [thread:$0]  (%p2002_p1), %s605_s28, 64, %s1786_s20, %s1978_s17   ;;  %v427_v5 = vld [vmem:[#allocation2] sm:$0x7] }
  0xd2   : > { %s1814_s26 = scalar_lea.hbm %s1959_s5, %s1716_s25  ;;  %s2003_s11 = scalar_lea.vmem [#allocation11], %s1689_s27 }
  0xd3   : > { %s559_s24 = sshll.u32 %s2003_s11, 4  ;;  %s1465_s30 = smov [#allocation11]   ;;  %s560_s24 = int_to_ptr.vmem [resolvable:$true] %s559_s24 }
  0xd4   : > { %s1256_s15 = scalar_lea.vmem %s560_s24, 64  ;;  %s1260_s18 = sshll.u32 %s1465_s30, 4  ;;  %s1261_s18 = int_to_ptr.vmem [resolvable:$false] %s1260_s18 }
  0xd5   : > { %p1257_p8 = scmp.ne.s32.totalorder %s560_s24, %s1256_s15  ;;  %s1262_s14 = scalar_lea.vmem %s1261_s18, 128 }
  0xd6   : > { %p1263_p12 = scmp.lt.s32.totalorder %s560_s24, %s1261_s18  ;;  %p1264_p0 = scmp.lt.s32.totalorder %s1262_s14, %s1256_s15 }
  0xd7   : > { %p1258_p2 = pnand %p1257_p8, %p2002_p1 }
  0xd8   : > { %p1265_p4 = por %p1264_p0, %p1263_p12 }
  0xd9   : > { %p1259_p10 = pneg %p1258_p2 }
  0xdb   : > { %p1266_p5 = pnand %p1265_p4, %p1259_p10 }
  0xdd   : > { %1269 = shalt.err (!%p1266_p5)
}
  0xde   : > { %s1270_s20 = scalar_lea.hbm %s1814_s26, 64  ;;  %s1274_s19 = scalar_lea.hbm %s1959_s5, 384 }
  0xdf   : > { %p1271_p6 = scmp.ne.s32.totalorder %s1814_s26, %s1270_s20  ;;  %p1275_p11 = scmp.lt.u32.totalorder %s1814_s26, %s1959_s5 }
  0xe0   : > { %p1276_p13 = scmp.lt.u32.totalorder %s1274_s19, %s1270_s20  ;;  %p1278_p8 = scmp.lt.u32.totalorder %s1270_s20, %s1814_s26 }
  0xe1   : > { %p1272_p7 = pnand %p1271_p6, %p2002_p1 }
  0xe2   : > { %p1277_p3 = por %p1276_p13, %p1275_p11 }
  0xe3   : > { %p1273_p9 = pneg %p1272_p7 }
  0xe4   : > { %p1279_p2 = por %p1278_p8, %p1277_p3 }
  0xe6   : > { %p1280_p10 = pnand %p1279_p2, %p1273_p9 }
  0xe8   : > { %1283 = shalt.err (!%p1280_p10)
}
  0xe9   : > { %s2004_s15 = scalar_lea.sflag [#allocation10], %s1692_s21  ;;  %s1841_s28 = scalar_lea.hbm %s1961_s7, %s1716_s25 }
  0xea   : > { %967 = dma.vmem_to_hbm [thread:$0]  (%p2002_p1), %s560_s24, 64, %s1814_s26, %s2004_s15  }
  0xeb   : > { %s412_s20 = scalar_lea.vmem [#allocation14], %s1689_s27  ;;  %s1849_s30 = scalar_lea.hbm %s1963_s9, %s1716_s25 }
  0xec   : > { %453 = vst.msk [vmem:[%s412_s20] sm:$0x7] %vm448_vm0, %v427_v5  ;;  %s589_s0 = sshll.u32 %s412_s20, 4  ;;  %s2005_s17 = scalar_lea.vmem [#allocation17], %s1689_s27  ;;  %s590_s0 = int_to_ptr.vmem [resolvable:$true] %s589_s0 }
  0xed   : > { %s619_s22 = sshll.u32 %s2005_s17, 4  ;;  %s1284_s1 = scalar_lea.vmem %s590_s0, 64  ;;  %s620_s22 = int_to_ptr.vmem [resolvable:$true] %s619_s22 }
  0xee   : > { %p1285_p12 = scmp.ne.s32.totalorder %s590_s0, %s1284_s1  ;;  %s1466_s26 = smov [#allocation14]  }
  0xef   : > { %s1288_s24 = sshll.u32 %s1466_s26, 4  ;;  %s1289_s24 = int_to_ptr.vmem [resolvable:$false] %s1288_s24 }
  0xf0   : > { %p1286_p0 = pnand %p1285_p12, %p2002_p1  ;;  %s1290_s15 = scalar_lea.vmem %s1289_s24, 128 }
  0xf1   : > { %p1291_p5 = scmp.lt.s32.totalorder %s590_s0, %s1289_s24  ;;  %p1292_p6 = scmp.lt.s32.totalorder %s1290_s15, %s1284_s1 }
  0xf2   : > { %p1287_p4 = pneg %p1286_p0 }
  0xf3   : > { %p1293_p7 = por %p1292_p6, %p1291_p5 }
  0xf5   : > { %p1294_p9 = pnand %p1293_p7, %p1287_p4 }
  0xf7   : > { %1297 = shalt.err (!%p1294_p9)
}
  0xf8   : > { %s1298_s27 = scalar_lea.hbm %s1841_s28, 64  ;;  %s1302_s18 = scalar_lea.hbm %s1961_s7, 384 }
  0xf9   : > { %p1299_p11 = scmp.ne.s32.totalorder %s1841_s28, %s1298_s27  ;;  %p1303_p8 = scmp.lt.u32.totalorder %s1841_s28, %s1961_s7 }
  0xfa   : > { %p1304_p2 = scmp.lt.u32.totalorder %s1302_s18, %s1298_s27  ;;  %p1306_p12 = scmp.lt.u32.totalorder %s1298_s27, %s1841_s28 }
  0xfb   : > { %p1300_p13 = pnand %p1299_p11, %p2002_p1 }
  0xfc   : > { %p1305_p10 = por %p1304_p2, %p1303_p8 }
  0xfd   : > { %p1301_p3 = pneg %p1300_p13 }
  0xfe   : > { %p1307_p0 = por %p1306_p12, %p1305_p10 }
 0x100   : > { %p1308_p4 = pnand %p1307_p0, %p1301_p3 }
 0x102   : > { %1311 = shalt.err (!%p1308_p4)
}
 0x103   : > { %s2006_s1 = scalar_lea.sflag [#allocation13], %s1692_s21  ;;  %s1312_s19 = scalar_lea.vmem %s620_s22, 64 }
 0x104   : > { %969 = dma.vmem_to_hbm [thread:$0]  (%p2002_p1), %s590_s0, 64, %s1841_s28, %s2006_s1  }
 0x105   : > { %p1313_p5 = scmp.ne.s32.totalorder %s620_s22, %s1312_s19  ;;  %s1467_s11 = smov [#allocation17]  }
 0x106   : > { %s1316_s26 = sshll.u32 %s1467_s11, 4  ;;  %s1317_s26 = int_to_ptr.vmem [resolvable:$false] %s1316_s26 }
 0x107   : > { %p1314_p6 = pnand %p1313_p5, %p2002_p1  ;;  %s1318_s24 = scalar_lea.vmem %s1317_s26, 128 }
 0x108   : > { %p1319_p9 = scmp.lt.s32.totalorder %s620_s22, %s1317_s26  ;;  %p1320_p11 = scmp.lt.s32.totalorder %s1318_s24, %s1312_s19 }
 0x109   : > { %p1315_p7 = pneg %p1314_p6 }
 0x10a   : > { %p1321_p13 = por %p1320_p11, %p1319_p9 }
 0x10c   : > { %p1322_p3 = pnand %p1321_p13, %p1315_p7 }
 0x10e   : > { %1325 = shalt.err (!%p1322_p3)
}
 0x10f   : > { %s1326_s28 = scalar_lea.hbm %s1849_s30, 64  ;;  %s1330_s27 = scalar_lea.hbm %s1963_s9, 384 }
 0x110   : > { %p1327_p8 = scmp.ne.s32.totalorder %s1849_s30, %s1326_s28  ;;  %p1331_p12 = scmp.lt.u32.totalorder %s1849_s30, %s1963_s9 }
 0x111   : > { %p1332_p0 = scmp.lt.u32.totalorder %s1330_s27, %s1326_s28  ;;  %p1334_p5 = scmp.lt.u32.totalorder %s1326_s28, %s1849_s30 }
 0x112   : > { %p1328_p2 = pnand %p1327_p8, %p2002_p1 }
 0x113   : > { %p1333_p4 = por %p1332_p0, %p1331_p12 }
 0x114   : > { %p1329_p10 = pneg %p1328_p2 }
 0x115   : > { %p1335_p6 = por %p1334_p5, %p1333_p4 }
 0x117   : > { %p1336_p7 = pnand %p1335_p6, %p1329_p10 }
 0x119   : > { %1339 = shalt.err (!%p1336_p7)
}
 0x11a   : > { %s2007_s18 = scalar_lea.sflag [#allocation16], %s1692_s21  ;;  %s946_s14 = smul.u32 6, %s1442_s13  ;;  %v458_v6 = vpop.permute.xlu0 %457  ;;  %vm468_vm2 = vcmask 523264   ;;  %v466_v7 = vpop.permute.xlu1 %465  ;;  %vm470_vm3 = vcmask 785408   ;;  %vm472_vm4 = vcmask 261120   ;;  %vm478_vm5 = vcmask 1042432  }
 0x11b   : > { %971 = dma.vmem_to_hbm [thread:$0]  (%p2002_p1), %s620_s22, 64, %s1849_s30, %s2007_s18   ;;  %vm479_vm6 = vcmask 522244   ;;  %v469_v8 = vsel %vm468_vm2, %v1705_v2, %v458_v6 }
 0x11c   : > { %s919_s20 = sshll.u32 %s1686_s29, 3  ;;  %s936_s1 = sshll.u32 %s1438_s12, 1  ;;  %vm480_vm7 = vmor %vm479_vm6, %vm478_vm5 }
 0x11d   : > { %s525_s19 = sadd.s32 %s946_s14, %s936_s1  ;;  %s384_s21 = scalar_lea.vmem [#allocation8], %s919_s20 }
 0x11e   : > { %s937_s11 = sshll.u32 %s525_s19, 6  ;;  %s529_s26 = sshll.u32 %s384_s21, 4  ;;  %v462_v9 = vpop.permute.xlu0 %461  ;;  %s1900_s26 = int_to_ptr.vmem [resolvable:$true] %s529_s26 }
 0x11f   : > { %v471_v10 = vsel %vm470_vm3, %v469_v8, %v462_v9  ;;  %v473_v11 = vsel %vm472_vm4, %v462_v9, %v466_v7  ;;  %s1898_s22 = scalar_lea.hbm %s1957_s3, %s937_s11  ;;  %s483_s30 = scalar_lea.sflag [#allocation4], %s1686_s29 }
 0x120   : > { %v476_v12 = vcombine.low %v471_v10, %v473_v11  ;;  %s1340_s24 = scalar_lea.vmem %s1900_s26, 128  ;;  %s1468_s28 = smov [#allocation8]  }
 0x121   : > { %p1341_p9 = scmp.ne.s32.totalorder %s1900_s26, %s1340_s24  ;;  %s1344_s0 = sshll.u32 %s1468_s28, 4  ;;  %s1345_s0 = int_to_ptr.vmem [resolvable:$false] %s1344_s0 }
 0x122   : > { %481 = vst.msk [vmem:[%s384_s21] sm:$0x77] %vm480_vm7, %v476_v12  ;;  %s1346_s15 = scalar_lea.vmem %s1345_s0, 256  ;;  %p1347_p3 = scmp.lt.s32.totalorder %s1900_s26, %s1345_s0 }
 0x123   : > { %p1342_p11 = pnand %p1341_p9, %p2002_p1  ;;  %p1348_p8 = scmp.lt.s32.totalorder %s1346_s15, %s1340_s24 }
 0x125   : > { %p1343_p13 = pneg %p1342_p11  ;;  %p1349_p2 = por %p1348_p8, %p1347_p3 }
 0x127   : > { %p1350_p10 = pnand %p1349_p2, %p1343_p13 }
 0x129   : > { %1353 = shalt.err (!%p1350_p10)
}
 0x12a   : > { %s1354_s29 = scalar_lea.hbm %s1898_s22, 128  ;;  %s1358_s17 = scalar_lea.hbm %s1957_s3, 768 }
 0x12b   : > { %p1355_p12 = scmp.ne.s32.totalorder %s1898_s22, %s1354_s29  ;;  %p1359_p5 = scmp.lt.u32.totalorder %s1898_s22, %s1957_s3 }
 0x12c   : > { %p1360_p6 = scmp.lt.u32.totalorder %s1358_s17, %s1354_s29  ;;  %p1362_p9 = scmp.lt.u32.totalorder %s1354_s29, %s1898_s22 }
 0x12d   : > { %p1356_p0 = pnand %p1355_p12, %p2002_p1 }
 0x12e   : > { %p1361_p7 = por %p1360_p6, %p1359_p5 }
 0x12f   : > { %p1357_p4 = pneg %p1356_p0 }
 0x130   : > { %p1363_p11 = por %p1362_p9, %p1361_p7 }
 0x132   : > { %p1364_p13 = pnand %p1363_p11, %p1357_p4 }
 0x134   : > { %1367 = shalt.err (!%p1364_p13)
}
 0x135   : > { %965 = dma.vmem_to_hbm [thread:$0]  (%p2002_p1), %s1900_s26, 128, %s1898_s22, %s483_s30  }
 0x136 PF: > { %s2008_s20 = sld [smem:[#allocation24_spill]]  ;;  %s2009_s1 = sld [smem:[#allocation30_spill]] }
 0x137   : > { %p1017_p3 = scmp.ge.s32.totalorder %s1454_s16, 2 }
 0x13c   : > { %s631_s19 = sand.u32 1, %s2008_s20   ;;  %p2010_p8 = scmp.ne.s32.totalorder %s2009_s1, 0 }
 0x13d   : > { %s632_s11 = scalar_lea.sflag [#allocation4], %s631_s19 }
 0x13e   : > { %p990_p2 = pnand %p1017_p3, %p2010_p8 }
 0x140   : > { %1409 = dma.done.wait (!%p990_p2), %s632_s11, 128  }
 0x141   : > { %1411 = vsyncadd (!%p990_p2), %s632_s11, 4294967168  ;;  %s2011_s21 = sadd.s32 4294967294, %s1454_s16  }
 0x142   : > { %s640_s12 = sand.u32 1, %s2011_s21  }
 0x143   : > { %s641_s13 = scalar_lea.sflag [#allocation10], %s640_s12 }
 0x144   : > { %1413 = dma.done.wait (!%p990_p2), %s641_s13, 128  }
 0x145   : > { %1415 = vsyncadd (!%p990_p2), %s641_s13, 4294967168  ;;  %s659_s23 = scalar_lea.sflag [#allocation13], %s640_s12 }
 0x146   : > { %1417 = dma.done.wait (!%p990_p2), %s659_s23, 128  }
 0x147   : > { %1419 = vsyncadd (!%p990_p2), %s659_s23, 4294967168  ;;  %s677_s26 = scalar_lea.sflag [#allocation16], %s640_s12 }
 0x148   : > { %1421 = dma.done.wait (!%p990_p2), %s677_s26, 128  }
 0x149   : > { %1423 = vsyncadd (!%p990_p2), %s677_s26, 4294967168  ;;  %s34_s16 = sadd.s32 1, %s1454_s16   ;;  %s2012_s22 = sld [smem:[#allocation25_spill]] }
 0x14a   : > { %p31_p1 = scmp.ge.s32.totalorder %s34_s16, 8   ;;  %s2013_s11 = sld [smem:[#allocation31_spill]] }
 0x14b   : > { %s2014_s12 = sld [smem:[#allocation26_spill]]  ;;  %s2015_s13 = sld [smem:[#allocation27_spill]] }
 0x14c   : > { %s2016_s14 = sld [smem:[#allocation28_spill]]  ;;  %s2017_s15 = sld [smem:[#allocation29_spill]] }
 0x14d   : > { %s2018_s30 = smov %s1430_s10  ;;  %33 = sbr.rel (!%p31_p1) target bundleno = 16 (0x10), region = 176 }
 0x14f   : > { %s2019_s10 = smov %s2012_s22 }
 0x154   :  { %691 = vsyncpa [#allocation3], 1 }
 0x155   :  { %693 = vsyncpa [#allocation3 + $0x1], 1 }
 0x156   :  { %694 = vsyncpa [#allocation6], 1 }
 0x157   :  { %695 = vsyncpa [#allocation4], 1 }
 0x158   :  { %697 = vsyncpa [#allocation4 + $0x1], 1 }
 0x159   :  { %698 = vsyncpa [#allocation10], 1 }
 0x15a   :  { %700 = vsyncpa [#allocation10 + $0x1], 1 }
 0x15b   :  { %701 = vsyncpa [#allocation13], 1 }
 0x15c   :  { %703 = vsyncpa [#allocation13 + $0x1], 1 }
 0x15d   :  { %704 = vsyncpa [#allocation16], 1 }
 0x15e   :  { %706 = vsyncpa [#allocation16 + $0x1], 1 }

// kernel: pair_encoder_forward.2
= control target key start
LH: loop header
LB: loop body
LE: loop exit
PB: predicated region body
PF: predicated region fallthrough
CT: control target
= control target key end

     0   :  { %16 = vsyncpa [#allocation3], 0  ;;  %s1670_s0 = inlined_call_operand.hbm [shape: f32[3,49,32], index: 0, kind: input, shape index: {}]   ;;  %s1671_s1 = inlined_call_operand.hbm [shape: f32[3,49,64], index: 1, kind: input, shape index: {}]   ;;  %s1672_s2 = inlined_call_operand.hbm [shape: f32[3,5], index: 2, kind: input, shape index: {}]   ;;  %s1673_s3 = inlined_call_operand.hbm [shape: f32[1,32], index: 3, kind: input, shape index: {}]   ;;  %s1674_s4 = inlined_call_operand.hbm [shape: f32[1,64], index: 4, kind: input, shape index: {}]   ;;  %s1675_s5 = inlined_call_operand.hbm [shape: f32[1,5], index: 5, kind: input, shape index: {}]   ;;  %s1676_s6 = inlined_call_operand.hbm [shape: f32[5,32], index: 6, kind: input, shape index: {}]   ;;  %s1677_s7 = inlined_call_operand.hbm [shape: f32[1,32], index: 7, kind: input, shape index: {}]   ;;  %s1678_s8 = inlined_call_operand.hbm [shape: f32[3,32], index: 8, kind: output, shape index: {0}]   ;;  %s1679_s9 = inlined_call_operand.hbm [shape: f32[3,64], index: 9, kind: output, shape index: {1}]   ;;  %s1680_s10 = inlined_call_operand.hbm [shape: f32[3,32], index: 10, kind: output, shape index: {2}]  }
   0x1   :  { %17 = vsyncpa [#allocation6], 0 }
   0x2   :  { %18 = vsyncpa [#allocation9], 0 }
   0x3   :  { %19 = vsyncpa [#allocation12], 0 }
   0x4   :  { %20 = vsyncpa [#allocation15], 0 }
   0x5   :  { %21 = vsyncpa [#allocation4], 0 }
   0x6   :  { %22 = vsyncpa [#allocation18], 0  ;;  %s1127_s13 = smov [#allocation5]   ;;  %s1128_s15 = smov [#allocation8]  }
   0x7   :  { %s40_s14 = sshll.u32 %s1127_s13, 4  ;;  %s63_s16 = sshll.u32 %s1128_s15, 4  ;;  %s41_s14 = int_to_ptr.vmem [resolvable:$true] %s40_s14  ;;  %s1200_s16 = int_to_ptr.vmem [resolvable:$true] %s63_s16 }
   0x8   :  { %s871_s19 = scalar_lea.hbm %s1671_s1, 2688 }
   0x9   :  { %p872_p0 = scmp.ne.s32.totalorder %s1671_s1, %s871_s19  ;;  %p875_p1 = scmp.lt.u32.totalorder %s871_s19, %s1671_s1 }
   0xb   :  { %p877_p2 = pnand %p875_p1, %p872_p0 }
   0xd   :  { %880 = shalt.err (!%p877_p2)
}
   0xe   :  { %s881_s24 = scalar_lea.vmem %s41_s14, 2688  ;;  %p886_p4 = scmp.lt.s32.totalorder %s41_s14, %s41_s14 }
   0xf   :  { %p882_p3 = scmp.ne.s32.totalorder %s41_s14, %s881_s24  ;;  %p887_p5 = scmp.lt.s32.totalorder %s881_s24, %s881_s24 }
  0x11   :  { %p888_p6 = por %p887_p5, %p886_p4 }
  0x13   :  { %p889_p7 = pnand %p888_p6, %p882_p3 }
  0x15   :  { %892 = shalt.err (!%p889_p7)
}
  0x16   :  { %s1129_s25 = smov 128   ;;  %s1130_s26 = smov 8  }
  0x17   :  { %46 = dma.hbm_to_vmem [thread:$0]  %s1671_s1, 2688, %s41_s14, [#allocation6], %s1129_s25, %s1129_s25, %s1130_s26  }
  0x18   :  { %s893_s11 = scalar_lea.hbm %s1673_s3, 16 }
  0x19   :  { %p894_p8 = scmp.ne.s32.totalorder %s1673_s3, %s893_s11  ;;  %p897_p9 = scmp.lt.u32.totalorder %s893_s11, %s1673_s3 }
  0x1b   :  { %p899_p10 = pnand %p897_p9, %p894_p8 }
  0x1d   :  { %902 = shalt.err (!%p899_p10)
}
  0x1e   :  { %s903_s18 = scalar_lea.vmem %s1200_s16, 16  ;;  %s907_s1 = scalar_lea.vmem %s1200_s16, 32 }
  0x1f   :  { %p904_p11 = scmp.ne.s32.totalorder %s1200_s16, %s903_s18  ;;  %p908_p12 = scmp.lt.s32.totalorder %s1200_s16, %s1200_s16 }
  0x20   :  { %p909_p13 = scmp.lt.s32.totalorder %s907_s1, %s903_s18 }
  0x22   :  { %p910_p0 = por %p909_p13, %p908_p12 }
  0x24   :  { %p911_p1 = pnand %p910_p0, %p904_p11 }
  0x26   :  { %914 = shalt.err (!%p911_p1)
}
  0x27   :  { %66 = dma.hbm_to_vmem [thread:$0]  %s1673_s3, 16, %s1200_s16, [#allocation9]  }
  0x28   :  { %s1131_s20 = smov [#allocation11]   ;;  %s1132_s22 = smov [#allocation2]  }
  0x29   :  { %s83_s21 = sshll.u32 %s1131_s20, 4  ;;  %s28_s23 = sshll.u32 %s1132_s22, 4  ;;  %s84_s21 = int_to_ptr.vmem [resolvable:$true] %s83_s21  ;;  %s1235_s23 = int_to_ptr.vmem [resolvable:$true] %s28_s23 }
  0x2a   :  { %s915_s28 = scalar_lea.hbm %s1675_s5, 16 }
  0x2b   :  { %p916_p2 = scmp.ne.s32.totalorder %s1675_s5, %s915_s28  ;;  %p919_p3 = scmp.lt.u32.totalorder %s915_s28, %s1675_s5 }
  0x2d   :  { %p921_p4 = pnand %p919_p3, %p916_p2 }
  0x2f   :  { %924 = shalt.err (!%p921_p4)
}
  0x30   :  { %s925_s3 = scalar_lea.vmem %s84_s21, 16  ;;  %s929_s16 = scalar_lea.vmem %s84_s21, 32 }
  0x31   :  { %p926_p5 = scmp.ne.s32.totalorder %s84_s21, %s925_s3  ;;  %p930_p6 = scmp.lt.s32.totalorder %s84_s21, %s84_s21 }
  0x32   :  { %p931_p7 = scmp.lt.s32.totalorder %s929_s16, %s925_s3 }
  0x34   :  { %p932_p8 = por %p931_p7, %p930_p6 }
  0x36   :  { %p933_p9 = pnand %p932_p8, %p926_p5 }
  0x38   :  { %936 = shalt.err (!%p933_p9)
}
  0x39   :  { %86 = dma.hbm_to_vmem [thread:$0]  %s1675_s5, 16, %s84_s21, [#allocation12]  }
  0x3a   :  { %s937_s1 = scalar_lea.hbm %s1670_s0, 2688 }
  0x3b   :  { %p938_p10 = scmp.ne.s32.totalorder %s1670_s0, %s937_s1  ;;  %p941_p11 = scmp.lt.u32.totalorder %s937_s1, %s1670_s0 }
  0x3d   :  { %p943_p12 = pnand %p941_p11, %p938_p10 }
  0x3f   :  { %946 = shalt.err (!%p943_p12)
}
  0x40   :  { %s947_s24 = scalar_lea.vmem %s1235_s23, 2688  ;;  %p952_p0 = scmp.lt.s32.totalorder %s1235_s23, %s1235_s23 }
  0x41   :  { %p948_p13 = scmp.ne.s32.totalorder %s1235_s23, %s947_s24  ;;  %p953_p1 = scmp.lt.s32.totalorder %s947_s24, %s947_s24 }
  0x43   :  { %p954_p2 = por %p953_p1, %p952_p0 }
  0x45   :  { %p955_p3 = pnand %p954_p2, %p948_p13 }
  0x47   :  { %958 = shalt.err (!%p955_p3)
}
  0x48   :  { %34 = dma.hbm_to_vmem [thread:$0]  %s1670_s0, 2688, %s1235_s23, [#allocation3], %s1129_s25, %s1129_s25, %s1130_s26  }
  0x49   :  { %s1133_s27 = smov [#allocation7]   ;;  %s1134_s29 = smov [#allocation10]  }
  0x4a   :  { %s53_s28 = sshll.u32 %s1133_s27, 4  ;;  %s73_s30 = sshll.u32 %s1134_s29, 4  ;;  %s54_s28 = int_to_ptr.vmem [resolvable:$true] %s53_s28  ;;  %s74_s30 = int_to_ptr.vmem [resolvable:$true] %s73_s30 }
  0x4b   :  { %s959_s3 = scalar_lea.hbm %s1672_s2, 64 }
  0x4c   :  { %p960_p4 = scmp.ne.s32.totalorder %s1672_s2, %s959_s3  ;;  %p963_p5 = scmp.lt.u32.totalorder %s959_s3, %s1672_s2 }
  0x4e   :  { %p965_p6 = pnand %p963_p5, %p960_p4 }
  0x50   :  { %968 = shalt.err (!%p965_p6)
}
  0x51   :  { %s969_s0 = scalar_lea.vmem %s54_s28, 64  ;;  %p974_p8 = scmp.lt.s32.totalorder %s54_s28, %s54_s28 }
  0x52   :  { %p970_p7 = scmp.ne.s32.totalorder %s54_s28, %s969_s0  ;;  %p975_p9 = scmp.lt.s32.totalorder %s969_s0, %s969_s0 }
  0x54   :  { %p976_p10 = por %p975_p9, %p974_p8 }
  0x56   :  { %p977_p11 = pnand %p976_p10, %p970_p7 }
  0x58   :  { %980 = shalt.err (!%p977_p11)
}
  0x59   :  { %56 = dma.hbm_to_vmem [thread:$0]  %s1672_s2, 64, %s54_s28, [#allocation6]  }
  0x5a   :  { %s981_s1 = scalar_lea.hbm %s1674_s4, 16 }
  0x5b   :  { %p982_p12 = scmp.ne.s32.totalorder %s1674_s4, %s981_s1  ;;  %p985_p13 = scmp.lt.u32.totalorder %s981_s1, %s1674_s4 }
  0x5d   :  { %p987_p0 = pnand %p985_p13, %p982_p12 }
  0x5f   :  { %990 = shalt.err (!%p987_p0)
}
  0x60   :  { %s991_s24 = scalar_lea.vmem %s74_s30, 16  ;;  %s995_s5 = scalar_lea.vmem %s74_s30, 32 }
  0x61   :  { %p992_p1 = scmp.ne.s32.totalorder %s74_s30, %s991_s24  ;;  %p996_p2 = scmp.lt.s32.totalorder %s74_s30, %s74_s30 }
  0x62   :  { %p997_p3 = scmp.lt.s32.totalorder %s995_s5, %s991_s24 }
  0x64   :  { %p998_p4 = por %p997_p3, %p996_p2 }
  0x66   :  { %p999_p5 = pnand %p998_p4, %p992_p1 }
  0x68   :  { %1002 = shalt.err (!%p999_p5)
}
  0x69   :  { %76 = dma.hbm_to_vmem [thread:$0]  %s1674_s4, 16, %s74_s30, [#allocation9]  }
  0x6a   :  { %s1135_s27 = smov [#allocation13]   ;;  %s1136_s29 = smov [#allocation14]  }
  0x6b   :  { %s93_s28 = sshll.u32 %s1135_s27, 4  ;;  %s103_s11 = sshll.u32 %s1136_s29, 4  ;;  %s94_s28 = int_to_ptr.vmem [resolvable:$true] %s93_s28  ;;  %s104_s11 = int_to_ptr.vmem [resolvable:$true] %s103_s11 }
  0x6c   :  { %s1003_s16 = scalar_lea.hbm %s1676_s6, 128 }
  0x6d   :  { %p1004_p6 = scmp.ne.s32.totalorder %s1676_s6, %s1003_s16  ;;  %p1007_p7 = scmp.lt.u32.totalorder %s1003_s16, %s1676_s6 }
  0x6f   :  { %p1009_p8 = pnand %p1007_p7, %p1004_p6 }
  0x71   :  { %1012 = shalt.err (!%p1009_p8)
}
  0x72   :  { %s1013_s4 = scalar_lea.vmem %s94_s28, 128  ;;  %p1018_p10 = scmp.lt.s32.totalorder %s94_s28, %s94_s28 }
  0x73   :  { %p1014_p9 = scmp.ne.s32.totalorder %s94_s28, %s1013_s4  ;;  %p1019_p11 = scmp.lt.s32.totalorder %s1013_s4, %s1013_s4 }
  0x75   :  { %p1020_p12 = por %p1019_p11, %p1018_p10 }
  0x77   :  { %p1021_p13 = pnand %p1020_p12, %p1014_p9 }
  0x79   :  { %1024 = shalt.err (!%p1021_p13)
}
  0x7a   :  { %96 = dma.hbm_to_vmem [thread:$0]  %s1676_s6, 128, %s94_s28, [#allocation12]  }
  0x7b   :  { %s1025_s18 = scalar_lea.hbm %s1677_s7, 16 }
  0x7c   :  { %p1026_p0 = scmp.ne.s32.totalorder %s1677_s7, %s1025_s18  ;;  %p1029_p1 = scmp.lt.u32.totalorder %s1025_s18, %s1677_s7 }
  0x7e   :  { %p1031_p2 = pnand %p1029_p1, %p1026_p0 }
  0x80   :  { %1034 = shalt.err (!%p1031_p2)
}
  0x81   :  { %s1035_s22 = scalar_lea.vmem %s104_s11, 16  ;;  %s1039_s24 = scalar_lea.vmem %s104_s11, 32 }
  0x82   :  { %p1036_p3 = scmp.ne.s32.totalorder %s104_s11, %s1035_s22  ;;  %p1040_p4 = scmp.lt.s32.totalorder %s104_s11, %s104_s11 }
  0x83   :  { %p1041_p5 = scmp.lt.s32.totalorder %s1039_s24, %s1035_s22 }
  0x85   :  { %p1042_p6 = por %p1041_p5, %p1040_p4 }
  0x87   :  { %p1043_p7 = pnand %p1042_p6, %p1036_p3 }
  0x89   :  { %1046 = shalt.err (!%p1043_p7)
}
  0x8a   :  { %106 = dma.hbm_to_vmem [thread:$0]  %s1677_s7, 16, %s104_s11, [#allocation15]  }
  0x8b   :  { %1113 = dma.done.wait [#allocation3], 2688  }
  0x8c   :  { %1114 = vsyncadd [#allocation3], 4294964608 }
  0x8d   :  { %1115 = dma.done.wait [#allocation6], 2752  }
  0x8e   :  { %1116 = vsyncadd [#allocation6], 4294964544 }
  0x8f   :  { %1117 = dma.done.wait [#allocation9], 32  }
  0x90   :  { %1118 = vsyncadd [#allocation9], 4294967264 }
  0x91   :  { %1119 = dma.done.wait [#allocation12], 144  }
  0x92   :  { %1120 = vsyncadd [#allocation12], 4294967152 }
  0x93   :  { %1121 = dma.done.wait [#allocation15], 16  }
  0x94   :  { %1122 = vsyncadd [#allocation15], 4294967280  ;;  %v1317_v0 = vld [vmem:[#allocation7] sm:$0x7]  ;;  %vm636_vm0 = vcmask 34816   ;;  %v1319_v1 = vld [vmem:[#allocation5 + $0x40] sm:$0xff] }
  0x95   :  { %vm426_vm1 = vcmask 523264   ;;  %v1321_v2 = vld [vmem:[#allocation5 + $0x38] sm:$0xff]  ;;  %v635_v3 = vmul.f32 %v1317_v0, %v1317_v0  ;;  %v413_v4 = vmul.f32 %v1319_v1, %v1319_v1  ;;  %v1329_v6 = vld [vmem:[#allocation2 + $0x38] sm:$0xff]  ;;  %vm173_vm2 = vcmask 261120   ;;  %v1346_v17 = vld [vmem:[#allocation2 + $0x70] sm:$0xff]  ;;  %s1142_s7 = smov [#allocation17]  }
  0x96   :  { %v412_v5 = vmul.f32 %v1321_v2, %v1321_v2  ;;  %v159_v7 = vmul.f32 %v1329_v6, %v1329_v6  ;;  %v1333_v8 = vld [vmem:[#allocation2 + $0x40] sm:$0xff]  ;;  %v1335_v9 = vld [vmem:[#allocation5 + $0x70] sm:$0xff]  ;;  %v166_v21 = vmul.f32 %v1346_v17, %v1346_v17  ;;  %v1356_v23 = vld [vmem:[#allocation5] sm:$0xff]  ;;  %v1137_v60 = vmov 1   ;;  %s727_s2 = sshll.u32 %s1142_s7, 4  ;;  %s1143_s21 = smov [#allocation16]   ;;  %s728_s2 = int_to_ptr.vmem [resolvable:$true] %s727_s2 }
  0x97   :  { %v637_v10 = vsel %vm636_vm0, %v635_v3, 0.0  ;;  %v452_v11 = vsel %vm426_vm1, %v413_v4, 0.0  ;;  %v160_v14 = vmul.f32 %v1333_v8, %v1333_v8  ;;  %v419_v15 = vmul.f32 %v1335_v9, %v1335_v9  ;;  %v1344_v16 = vld [vmem:[#allocation5 + $0x78] sm:$0xff]  ;;  %v1354_v22 = vld [vmem:[#allocation2 + $0x78] sm:$0xff]  ;;  %v1364_v28 = vld [vmem:[#allocation5 + $0x8] sm:$0xff]  ;;  %780 = vset.pattern.permute.xlu0 %v1137_v60  ;;  %s717_s27 = sshll.u32 %s1143_s21, 4  ;;  %p1052_p9 = scmp.lt.s32.totalorder %s728_s2, %s728_s2  ;;  %s718_s27 = int_to_ptr.vmem [resolvable:$true] %s717_s27 }
  0x98   :  { %638 = vadd.xlane.f32.xlu0 %v637_v10  ;;  %453 = vadd.xlane.f32.xlu1 %v452_v11  ;;  %v449_v12 = vsel %vm426_vm1, %v412_v5, 0.0  ;;  %v196_v13 = vsel %vm173_vm2, %v159_v7, 0.0  ;;  %v420_v20 = vmul.f32 %v1344_v16, %v1344_v16  ;;  %v217_v25 = vsel %vm173_vm2, %v166_v21, 0.0  ;;  %v1366_v29 = vld [vmem:[#allocation5 + $0x48] sm:$0xff]  ;;  %v1374_v34 = vld [vmem:[#allocation2 + $0x8] sm:$0xff]  ;;  %v1376_v35 = vld [vmem:[#allocation2] sm:$0xff] }
  0x99   :  { %v199_v18 = vsel %vm173_vm2, %v160_v14, 0.0  ;;  %v470_v19 = vsel %vm426_vm1, %v419_v15, 0.0  ;;  %v167_v26 = vmul.f32 %v1354_v22, %v1354_v22  ;;  %v405_v27 = vmul.f32 %v1356_v23, %v1356_v23  ;;  %v1384_v40 = vld [vmem:[#allocation5 + $0x80] sm:$0xff]  ;;  %v1394_v46 = vld [vmem:[#allocation5 + $0x10] sm:$0xff]  ;;  %v1396_v47 = vld [vmem:[#allocation2 + $0x80] sm:$0xff]  ;;  %s1047_s28 = scalar_lea.vmem %s728_s2, 64 }
  0x9a   :  { %v473_v24 = vsel %vm426_vm1, %v420_v20, 0.0  ;;  %v406_v32 = vmul.f32 %v1364_v28, %v1364_v28  ;;  %v414_v33 = vmul.f32 %v1366_v29, %v1366_v29  ;;  %v153_v38 = vmul.f32 %v1374_v34, %v1374_v34  ;;  %v1386_v41 = vld [vmem:[#allocation2 + $0x48] sm:$0xff]  ;;  %v1404_v52 = vld [vmem:[#allocation2 + $0x10] sm:$0xff]  ;;  %v1406_v53 = vld [vmem:[#allocation5 + $0x50] sm:$0xff]  ;;  %p1048_p8 = scmp.ne.s32.totalorder %s728_s2, %s1047_s28  ;;  %p1053_p10 = scmp.lt.s32.totalorder %s1047_s28, %s1047_s28 }
  0x9b   :  { %v220_v30 = vsel %vm173_vm2, %v167_v26, 0.0  ;;  %v427_v31 = vsel %vm426_vm1, %v405_v27, 0.0  ;;  %v152_v39 = vmul.f32 %v1376_v35, %v1376_v35  ;;  %v421_v44 = vmul.f32 %v1384_v40, %v1384_v40  ;;  %v1414_v58 = vld [vmem:[#allocation5 + $0x88] sm:$0xff]  ;;  %v1424_v5 = vld [vmem:[#allocation5 + $0x18] sm:$0xff]  ;;  %v1426_v7 = vld [vmem:[#allocation2 + $0x88] sm:$0xff] }
  0x9c   :  { %450 = vadd.xlane.f32.xlu0 %v449_v12  ;;  %197 = vadd.xlane.f32.xlu1 %v196_v13  ;;  %v430_v36 = vsel %vm426_vm1, %v406_v32, 0.0  ;;  %v455_v37 = vsel %vm426_vm1, %v414_v33, 0.0  ;;  %v177_v42 = vsel %vm173_vm2, %v153_v38, 0.0  ;;  %v161_v45 = vmul.f32 %v1386_v41, %v1386_v41  ;;  %v1416_v59 = vld [vmem:[#allocation2 + $0x50] sm:$0xff]  ;;  %v1434_v14 = vld [vmem:[#allocation2 + $0x18] sm:$0xff]  ;;  %v1436_v15 = vld [vmem:[#allocation5 + $0x58] sm:$0xff]  ;;  %p1054_p11 = por %p1053_p10, %p1052_p9 }
  0x9d   :  { %v174_v43 = vsel %vm173_vm2, %v152_v39, 0.0  ;;  %v476_v48 = vsel %vm426_vm1, %v421_v44, 0.0  ;;  %v407_v50 = vmul.f32 %v1394_v46, %v1394_v46  ;;  %v168_v51 = vmul.f32 %v1396_v47, %v1396_v47  ;;  %v1454_v32 = vld [vmem:[#allocation5 + $0x20] sm:$0xff]  ;;  %v1456_v33 = vld [vmem:[#allocation2 + $0x90] sm:$0xff] }
  0x9e   :  { %v202_v49 = vsel %vm173_vm2, %v161_v45, 0.0  ;;  %v154_v54 = vmul.f32 %v1404_v52, %v1404_v52  ;;  %v415_v55 = vmul.f32 %v1406_v53, %v1406_v53  ;;  %v1138_v61 = vmov 0   ;;  %v1484_v60 = vld [vmem:[#allocation5 + $0x28] sm:$0xff]  ;;  %p1055_p12 = pnand %p1054_p11, %p1048_p8 }
  0x9f   :  { %v433_v56 = vsel %vm426_vm1, %v407_v50, 0.0  ;;  %v223_v57 = vsel %vm173_vm2, %v168_v51, 0.0  ;;  %779 = vset.pattern.permute.xlu1 %v1138_v61  ;;  %v422_v3 = vmul.f32 %v1414_v58, %v1414_v58  ;;  %v162_v4 = vmul.f32 %v1416_v59, %v1416_v59  ;;  %v1474_v50 = vld [vmem:[#allocation5 + $0x98] sm:$0xff]  ;;  %v1486_v61 = vld [vmem:[#allocation2 + $0x98] sm:$0xff] }
  0xa0   :  { %200 = vadd.xlane.f32.xlu0 %v199_v18  ;;  %471 = vadd.xlane.f32.xlu1 %v470_v19  ;;  %v180_v62 = vsel %vm173_vm2, %v154_v54, 0.0  ;;  %v458_v63 = vsel %vm426_vm1, %v415_v55, 0.0  ;;  %v408_v12 = vmul.f32 %v1424_v5, %v1424_v5  ;;  %v169_v13 = vmul.f32 %v1426_v7, %v1426_v7  ;;  %v1476_v51 = vld [vmem:[#allocation2 + $0x60] sm:$0xff] }
  0xa1   :  { %v479_v10 = vsel %vm426_vm1, %v422_v3, 0.0  ;;  %v205_v11 = vsel %vm173_vm2, %v162_v4, 0.0  ;;  %v155_v20 = vmul.f32 %v1434_v14, %v1434_v14  ;;  %v416_v21 = vmul.f32 %v1436_v15, %v1436_v15 }
  0xa2   :  { %v436_v18 = vsel %vm426_vm1, %v408_v12, 0.0  ;;  %v226_v19 = vsel %vm173_vm2, %v169_v13, 0.0  ;;  %v409_v38 = vmul.f32 %v1454_v32, %v1454_v32  ;;  %v170_v39 = vmul.f32 %v1456_v33, %v1456_v33 }
  0xa3   :  { %v183_v26 = vsel %vm173_vm2, %v155_v20, 0.0  ;;  %v461_v27 = vsel %vm426_vm1, %v416_v21, 0.0  ;;  %v410_v3 = vmul.f32 %v1484_v60, %v1484_v60  ;;  %v171_v4 = vmul.f32 %v1486_v61, %v1486_v61  ;;  %v1504_v20 = vld [vmem:[#allocation5 + $0xa0] sm:$0x1] }
  0xa4   :  { %474 = vadd.xlane.f32.xlu0 %v473_v24  ;;  %218 = vadd.xlane.f32.xlu1 %v217_v25  ;;  %v1444_v24 = vld [vmem:[#allocation5 + $0x90] sm:$0xff]  ;;  %v439_v44 = vsel %vm426_vm1, %v409_v38, 0.0  ;;  %v229_v45 = vsel %vm173_vm2, %v170_v39, 0.0  ;;  %vm445_vm3 = vcmask 516096   ;;  %1688 = vst [vmem:[#allocation28_spill] sm:$0xff] %v1504_v20  ;;  %vm192_vm4 = vcmask 253952  }
  0xa5   :  { %v1446_v25 = vld [vmem:[#allocation2 + $0x58] sm:$0xff]  ;;  %v442_v12 = vsel %vm426_vm1, %v410_v3, 0.0  ;;  %v232_v13 = vsel %vm173_vm2, %v171_v4, 0.0  ;;  %v1506_v21 = vld [vmem:[#allocation2 + $0x68] sm:$0x1]  ;;  %vm376_vm5 = vcmask 1041409  }
  0xa6   :  { %1689 = vst [vmem:[#allocation29_spill] sm:$0xff] %v1506_v21  ;;  %vm379_vm6 = vcmask 1042434   ;;  %vm632_vm7 = vcmask 518144  }
  0xa8   :  { %221 = vadd.xlane.f32.xlu0 %v220_v30  ;;  %428 = vadd.xlane.f32.xlu1 %v427_v31  ;;  %v423_v30 = vmul.f32 %v1444_v24, %v1444_v24  ;;  %v163_v31 = vmul.f32 %v1446_v25, %v1446_v25 }
  0xac   :  { %431 = vadd.xlane.f32.xlu0 %v430_v36  ;;  %456 = vadd.xlane.f32.xlu1 %v455_v37  ;;  %v482_v36 = vsel %vm426_vm1, %v423_v30, 0.0  ;;  %v208_v37 = vsel %vm173_vm2, %v163_v31, 0.0  ;;  %v425_v30 = vmul.f32 %v1504_v20, %v1504_v20  ;;  %v165_v31 = vmul.f32 %v1506_v21, %v1506_v21 }
  0xae   :  { %v488_v38 = vsel %vm445_vm3, %v425_v30, 0.0  ;;  %v214_v39 = vsel %vm192_vm4, %v165_v31, 0.0 }
  0xb0   :  { %178 = vadd.xlane.f32.xlu1 %v177_v42  ;;  %175 = vadd.xlane.f32.xlu0 %v174_v43  ;;  %v1464_v42 = vld [vmem:[#allocation2 + $0x20] sm:$0xff]  ;;  %v1466_v43 = vld [vmem:[#allocation5 + $0x60] sm:$0xff] }
  0xb4   :  { %477 = vadd.xlane.f32.xlu1 %v476_v48  ;;  %203 = vadd.xlane.f32.xlu0 %v202_v49  ;;  %v156_v48 = vmul.f32 %v1464_v42, %v1464_v42  ;;  %v417_v49 = vmul.f32 %v1466_v43, %v1466_v43 }
  0xb6   :  { %v186_v54 = vsel %vm173_vm2, %v156_v48, 0.0  ;;  %v464_v55 = vsel %vm426_vm1, %v417_v49, 0.0  ;;  %v1524_v48 = vld [vmem:[#allocation2 + $0x30] sm:$0x1] }
  0xb7   :  { %1692 = vst [vmem:[#allocation32_spill] sm:$0xff] %v1524_v48 }
  0xb8   :  { %434 = vadd.xlane.f32.xlu1 %v433_v56  ;;  %224 = vadd.xlane.f32.xlu0 %v223_v57  ;;  %v424_v56 = vmul.f32 %v1474_v50, %v1474_v50  ;;  %v164_v57 = vmul.f32 %v1476_v51, %v1476_v51 }
  0xbc   :  { %181 = vadd.xlane.f32.xlu1 %v180_v62  ;;  %459 = vadd.xlane.f32.xlu0 %v458_v63  ;;  %v485_v62 = vsel %vm426_vm1, %v424_v56, 0.0  ;;  %v211_v63 = vsel %vm173_vm2, %v164_v57, 0.0 }
  0xc0   :  { %480 = vadd.xlane.f32.xlu1 %v479_v10  ;;  %206 = vadd.xlane.f32.xlu0 %v205_v11  ;;  %v1494_v10 = vld [vmem:[#allocation2 + $0x28] sm:$0xff]  ;;  %v1496_v11 = vld [vmem:[#allocation5 + $0x68] sm:$0x1] }
  0xc1   :  { %1687 = vst [vmem:[#allocation27_spill] sm:$0xff] %v1494_v10 }
  0xc4   :  { %437 = vadd.xlane.f32.xlu1 %v436_v18  ;;  %227 = vadd.xlane.f32.xlu0 %v226_v19  ;;  %v157_v18 = vmul.f32 %v1494_v10, %v1494_v10  ;;  %v418_v19 = vmul.f32 %v1496_v11, %v1496_v11 }
  0xc8   :  { %184 = vadd.xlane.f32.xlu1 %v183_v26  ;;  %462 = vadd.xlane.f32.xlu0 %v461_v27  ;;  %v189_v26 = vsel %vm173_vm2, %v157_v18, 0.0  ;;  %v467_v27 = vsel %vm445_vm3, %v418_v19, 0.0 }
  0xcc   :  { %483 = vadd.xlane.f32.xlu1 %v482_v36  ;;  %209 = vadd.xlane.f32.xlu0 %v208_v37  ;;  %v1514_v36 = vld [vmem:[#allocation5 + $0x30] sm:$0x1]  ;;  %v1516_v37 = vld [vmem:[#allocation2 + $0xa0] sm:$0x1] }
  0xcd   :  { %1690 = vst [vmem:[#allocation30_spill] sm:$0xff] %v1514_v36  ;;  %1691 = vst [vmem:[#allocation31_spill] sm:$0xff] %v1516_v37 }
  0xd0   :  { %440 = vadd.xlane.f32.xlu1 %v439_v44  ;;  %230 = vadd.xlane.f32.xlu0 %v229_v45  ;;  %v411_v44 = vmul.f32 %v1514_v36, %v1514_v36  ;;  %v172_v45 = vmul.f32 %v1516_v37, %v1516_v37 }
  0xd2   :  { %v446_v49 = vsel %vm445_vm3, %v411_v44, 0.0 }
  0xd4   :  { %187 = vadd.xlane.f32.xlu1 %v186_v54  ;;  %465 = vadd.xlane.f32.xlu0 %v464_v55  ;;  %v235_v54 = vsel %vm192_vm4, %v172_v45, 0.0  ;;  %v158_v55 = vmul.f32 %v1524_v48, %v1524_v48 }
  0xd6   :  { %v193_v56 = vsel %vm192_vm4, %v158_v55, 0.0 }
  0xd8   :  { %486 = vadd.xlane.f32.xlu1 %v485_v62  ;;  %212 = vadd.xlane.f32.xlu0 %v211_v63 }
  0xdc   :  { %443 = vadd.xlane.f32.xlu1 %v442_v12  ;;  %233 = vadd.xlane.f32.xlu0 %v232_v13 }
  0xe0   :  { %190 = vadd.xlane.f32.xlu1 %v189_v26  ;;  %468 = vadd.xlane.f32.xlu0 %v467_v27 }
  0xe4   :  { %489 = vadd.xlane.f32.xlu1 %v488_v38  ;;  %215 = vadd.xlane.f32.xlu0 %v214_v39  ;;  %v759_v39 = vld [vmem:[#allocation11] ss:$0 sm:$0xff] }
  0xe8   :  { %447 = vadd.xlane.f32.xlu1 %v446_v49  ;;  %236 = vadd.xlane.f32.xlu0 %v235_v54 }
  0xec   :  { %194 = vadd.xlane.f32.xlu0 %v193_v56 }
 0x125   :  { %v639_v57 = vpop.xlane.xlu0 %638  ;;  %v454_v62 = vpop.xlane.xlu1 %453 }
 0x126   :  { %v640_v63 = vmax.f32 %v639_v57, 1e-24  ;;  %v499_v3 = vmax.f32 %v454_v62, 1e-24 }
 0x128   :  { %785 = vrsqrt.f32 %v640_v63 }
 0x129   :  { %787 = vrsqrt.f32 %v499_v3  ;;  %v451_v4 = vpop.xlane.xlu0 %450  ;;  %v198_v12 = vpop.xlane.xlu1 %197 }
 0x12a   :  { %v498_v13 = vmax.f32 %v451_v4, 1e-24  ;;  %v245_v18 = vmax.f32 %v198_v12, 1e-24 }
 0x12c   :  { %789 = vrsqrt.f32 %v498_v13 }
 0x12d   :  { %791 = vrsqrt.f32 %v245_v18  ;;  %v201_v19 = vpop.xlane.xlu0 %200  ;;  %v472_v26 = vpop.xlane.xlu1 %471 }
 0x12e   :  { %v246_v27 = vmax.f32 %v201_v19, 1e-24 }
 0x130   :  { %793 = vrsqrt.f32 %v246_v27 }
 0x131   :  { %v475_v30 = vpop.xlane.xlu0 %474  ;;  %v219_v31 = vpop.xlane.xlu1 %218 }
 0x132   :  { %v786_v38 = vpop.eup %785 }
 0x133   :  { %v788_v44 = vpop.eup %787  ;;  %v642_v45 = vmul.f32 %v786_v38, %v1317_v0  ;;  %v1139_v38 = vmov 2  }
 0x134   :  { %v541_v49 = vmul.f32 %v788_v44, %v1319_v1 }
 0x135   :  { %v222_v54 = vpop.xlane.xlu0 %221  ;;  %v429_v55 = vpop.xlane.xlu1 %428  ;;  %v650_v56 = vmul.f32 %v759_v39, %v642_v45  ;;  %v1140_v39 = vmov 4  }
 0x136   :  { %v790_v57 = vpop.eup %789  ;;  %v574_v63 = vsel %vm426_vm1, %v541_v49, 0.0  ;;  %v1141_v49 = vmov 3   ;;  %v253_v37 = vmax.f32 %v222_v54, 1e-24 }
 0x137   :  { %v792_v62 = vpop.eup %791  ;;  %v540_v3 = vmul.f32 %v790_v57, %v1321_v2  ;;  %661 = vperm.xlu1 %779, %v650_v56   ;;  %671 = vperm.xlu0 %780, %v650_v56  }
 0x138   :  { %v287_v4 = vmul.f32 %v792_v62, %v1329_v6 }
 0x139   :  { %v573_v12 = vsel %vm426_vm1, %v540_v3, 0.0  ;;  %v432_v13 = vpop.xlane.xlu0 %431  ;;  %v457_v18 = vpop.xlane.xlu1 %456 }
 0x13a   :  { %v794_v0 = vpop.eup %793  ;;  %v1537_v19 = vadd.f32 %v574_v63, %v573_v12  ;;  %v320_v1 = vsel %vm173_vm2, %v287_v4, 0.0  ;;  %v505_v12 = vmax.f32 %v472_v26, 1e-24  ;;  %v500_v10 = vmax.f32 %v457_v18, 1e-24 }
 0x13b   :  { %v288_v27 = vmul.f32 %v794_v0, %v1333_v8  ;;  %781 = vset.pattern.permute.xlu1 %v1139_v38  ;;  %784 = vset.pattern.permute.xlu0 %v1140_v39  ;;  %v506_v0 = vmax.f32 %v475_v30, 1e-24 }
 0x13c   :  { %681 = vperm.xlu1 %781, %v650_v56   ;;  %795 = vrsqrt.f32 %v505_v12 }
 0x13d   :  { %v321_v2 = vsel %vm173_vm2, %v288_v27, 0.0  ;;  %v179_v44 = vpop.xlane.xlu1 %178  ;;  %v176_v6 = vpop.xlane.xlu0 %175  ;;  %v252_v27 = vmax.f32 %v219_v31, 1e-24  ;;  %797 = vrsqrt.f32 %v506_v0 }
 0x13e   :  { %v1542_v45 = vadd.f32 %v321_v2, %v320_v1  ;;  %v491_v1 = vmax.f32 %v429_v55, 1e-24  ;;  %v492_v2 = vmax.f32 %v432_v13, 1e-24 }
 0x13f   :  { %799 = vrsqrt.f32 %v252_v27 }
 0x140   :  { %782 = vset.pattern.permute.xlu1 %v1141_v49  ;;  %801 = vrsqrt.f32 %v253_v37 }
 0x141   :  { %691 = vperm.xlu1 %782, %v650_v56   ;;  %v478_v57 = vpop.xlane.xlu1 %477  ;;  %v204_v62 = vpop.xlane.xlu0 %203  ;;  %803 = vrsqrt.f32 %v491_v1 }
 0x142   :  { %805 = vrsqrt.f32 %v492_v2  ;;  %v507_v21 = vmax.f32 %v478_v57, 1e-24  ;;  %v247_v20 = vmax.f32 %v204_v62, 1e-24 }
 0x143   :  { %807 = vrsqrt.f32 %v500_v10 }
 0x145   :  { %783 = vset.pattern.permute.xlu1 %v1140_v39  ;;  %v435_v63 = vpop.xlane.xlu1 %434  ;;  %v225_v3 = vpop.xlane.xlu0 %224  ;;  %v239_v39 = vmax.f32 %v179_v44, 1e-24 }
 0x146   :  { %701 = vperm.xlu1 %783, %v650_v56   ;;  %v238_v56 = vmax.f32 %v176_v6, 1e-24  ;;  %v493_v31 = vmax.f32 %v435_v63, 1e-24  ;;  %v254_v54 = vmax.f32 %v225_v3, 1e-24  ;;  %v796_v12 = vpop.eup %795 }
 0x147   :  { %809 = vrsqrt.f32 %v239_v39  ;;  %v798_v37 = vpop.eup %797 }
 0x148   :  { %811 = vrsqrt.f32 %v238_v56  ;;  %v548_v63 = vmul.f32 %v798_v37, %v1344_v16 }
 0x149   :  { %v182_v8 = vpop.xlane.xlu1 %181  ;;  %v460_v4 = vpop.xlane.xlu0 %459  ;;  %813 = vrsqrt.f32 %v507_v21  ;;  %v547_v21 = vmul.f32 %v796_v12, %v1335_v9 }
 0x14a   :  { %815 = vrsqrt.f32 %v247_v20  ;;  %v240_v18 = vmax.f32 %v182_v8, 1e-24  ;;  %v501_v44 = vmax.f32 %v460_v4, 1e-24  ;;  %v800_v0 = vpop.eup %799 }
 0x14b   :  { %817 = vrsqrt.f32 %v493_v31  ;;  %v802_v57 = vpop.eup %801  ;;  %v294_v8 = vmul.f32 %v800_v0, %v1346_v17  ;;  %v592_v16 = vsel %vm426_vm1, %v547_v21, 0.0 }
 0x14c   :  { %819 = vrsqrt.f32 %v254_v54  ;;  %v804_v1 = vpop.eup %803 }
 0x14d   :  { %v481_v38 = vpop.xlane.xlu1 %480  ;;  %v207_v48 = vpop.xlane.xlu0 %206  ;;  %821 = vrsqrt.f32 %v240_v18 }
 0x14e   :  { %v508_v6 = vmax.f32 %v481_v38, 1e-24  ;;  %v248_v27 = vmax.f32 %v207_v48, 1e-24  ;;  %v806_v20 = vpop.eup %805  ;;  %823 = vrsqrt.f32 %v501_v44  ;;  %v295_v38 = vmul.f32 %v802_v57, %v1354_v22 }
 0x14f   :  { %v808_v2 = vpop.eup %807  ;;  %v533_v22 = vmul.f32 %v804_v1, %v1356_v23  ;;  %v534_v37 = vmul.f32 %v806_v20, %v1364_v28 }
 0x150   :  { %825 = vrsqrt.f32 %v508_v6  ;;  %v542_v0 = vmul.f32 %v808_v2, %v1366_v29 }
 0x151   :  { %v438_v49 = vpop.xlane.xlu1 %437  ;;  %v228_v36 = vpop.xlane.xlu0 %227  ;;  %827 = vrsqrt.f32 %v248_v27  ;;  %v554_v20 = vsel %vm426_vm1, %v533_v22, 0.0 }
 0x152   :  { %v494_v3 = vmax.f32 %v438_v49, 1e-24  ;;  %v255_v4 = vmax.f32 %v228_v36, 1e-24  ;;  %v810_v39 = vpop.eup %809  ;;  %v593_v49 = vsel %vm426_vm1, %v548_v63, 0.0  ;;  %v339_v36 = vsel %vm173_vm2, %v294_v8, 0.0 }
 0x153   :  { %v812_v54 = vpop.eup %811  ;;  %v281_v6 = vmul.f32 %v810_v39, %v1374_v34  ;;  %v594_v28 = vadd.f32 %v593_v49, %v592_v16 }
 0x154   :  { %829 = vrsqrt.f32 %v494_v3  ;;  %v814_v12 = vpop.eup %813  ;;  %v280_v23 = vmul.f32 %v812_v54, %v1376_v35  ;;  %v555_v35 = vsel %vm426_vm1, %v534_v37, 0.0 }
 0x155   :  { %v185_v26 = vpop.xlane.xlu1 %184  ;;  %v463_v30 = vpop.xlane.xlu0 %462  ;;  %831 = vrsqrt.f32 %v255_v4  ;;  %v302_v2 = vsel %vm173_vm2, %v281_v6, 0.0 }
 0x156   :  { %v241_v48 = vmax.f32 %v185_v26, 1e-24  ;;  %v502_v56 = vmax.f32 %v463_v30, 1e-24  ;;  %v816_v18 = vpop.eup %815  ;;  %v340_v30 = vsel %vm173_vm2, %v295_v38, 0.0 }
 0x157   :  { %v818_v21 = vpop.eup %817  ;;  %v341_v34 = vadd.f32 %v340_v30, %v339_v36 }
 0x158   :  { %833 = vrsqrt.f32 %v241_v48  ;;  %v820_v63 = vpop.eup %819  ;;  %v535_v16 = vmul.f32 %v818_v21, %v1394_v46 }
 0x159   :  { %v484_v55 = vpop.xlane.xlu1 %483  ;;  %v210_v13 = vpop.xlane.xlu0 %209  ;;  %835 = vrsqrt.f32 %v502_v56 }
 0x15a   :  { %v509_v17 = vmax.f32 %v484_v55, 1e-24  ;;  %v249_v26 = vmax.f32 %v210_v13, 1e-24  ;;  %v549_v13 = vmul.f32 %v814_v12, %v1384_v40  ;;  %v822_v3 = vpop.eup %821  ;;  %v576_v40 = vsel %vm426_vm1, %v542_v0, 0.0 }
 0x15b   :  { %v824_v4 = vpop.eup %823  ;;  %v296_v12 = vmul.f32 %v820_v63, %v1396_v47  ;;  %v282_v36 = vmul.f32 %v822_v3, %v1404_v52  ;;  %v577_v30 = vadd.f32 %v576_v40, %v1537_v19 }
 0x15c   :  { %837 = vrsqrt.f32 %v509_v17  ;;  %v826_v48 = vpop.eup %825  ;;  %v595_v39 = vsel %vm426_vm1, %v549_v13, 0.0 }
 0x15d   :  { %v441_v10 = vpop.xlane.xlu1 %440  ;;  %v1544_v62 = vpop.xlane.xlu0 %230  ;;  %839 = vrsqrt.f32 %v249_v26  ;;  %v596_v46 = vadd.f32 %v595_v39, %v594_v28  ;;  %v342_v19 = vsel %vm173_vm2, %v296_v12, 0.0 }
 0x15e   :  { %v495_v44 = vmax.f32 %v441_v10, 1e-24  ;;  %v256_v1 = vmax.f32 %v1544_v62, 1e-24  ;;  %v289_v10 = vmul.f32 %v816_v18, %v1386_v41  ;;  %v301_v41 = vsel %vm173_vm2, %v280_v23, 0.0 }
 0x15f   :  { %v556_v18 = vadd.f32 %v555_v35, %v554_v20  ;;  %v303_v37 = vadd.f32 %v302_v2, %v301_v41  ;;  %v343_v40 = vadd.f32 %v342_v19, %v341_v34 }
 0x160   :  { %841 = vrsqrt.f32 %v495_v44  ;;  %v323_v54 = vsel %vm173_vm2, %v289_v10, 0.0 }
 0x161   :  { %v1550_v31 = vpop.xlane.xlu1 %187  ;;  %v466_v9 = vpop.xlane.xlu0 %465  ;;  %v324_v52 = vadd.f32 %v323_v54, %v1542_v45 }
 0x162   :  { %v503_v55 = vmax.f32 %v466_v9, 1e-24  ;;  %v242_v56 = vmax.f32 %v1550_v31, 1e-24  ;;  %v828_v9 = vpop.eup %827  ;;  %v543_v31 = vmul.f32 %v824_v4, %v1406_v53  ;;  %v304_v53 = vsel %vm173_vm2, %v282_v36, 0.0 }
 0x163   :  { %v830_v17 = vpop.eup %829  ;;  %v290_v13 = vmul.f32 %v828_v9, %v1416_v59  ;;  %v305_v59 = vadd.f32 %v304_v53, %v303_v37 }
 0x164   :  { %843 = vrsqrt.f32 %v503_v55  ;;  %v832_v26 = vpop.eup %831  ;;  %v550_v55 = vmul.f32 %v826_v48, %v1414_v58  ;;  %v578_v58 = vsel %vm426_vm1, %v543_v31, 0.0  ;;  %v536_v63 = vmul.f32 %v830_v17, %v1424_v5 }
 0x165   :  { %v487_v57 = vpop.xlane.xlu1 %486  ;;  %v213_v27 = vpop.xlane.xlu0 %212  ;;  %845 = vrsqrt.f32 %v256_v1  ;;  %v297_v28 = vmul.f32 %v832_v26, %v1426_v7  ;;  %v325_v5 = vsel %vm173_vm2, %v290_v13, 0.0 }
 0x166   :  { %v510_v29 = vmax.f32 %v487_v57, 1e-24  ;;  %v250_v8 = vmax.f32 %v213_v27, 1e-24  ;;  %v834_v6 = vpop.eup %833  ;;  %v557_v27 = vsel %vm426_vm1, %v535_v16, 0.0  ;;  %v597_v20 = vsel %vm426_vm1, %v550_v55, 0.0 }
 0x167   :  { %v836_v47 = vpop.eup %835  ;;  %v558_v3 = vadd.f32 %v557_v27, %v556_v18  ;;  %v598_v41 = vadd.f32 %v597_v20, %v596_v46  ;;  %v559_v39 = vsel %vm426_vm1, %v536_v63, 0.0  ;;  %v326_v12 = vadd.f32 %v325_v5, %v324_v52 }
 0x168   :  { %847 = vrsqrt.f32 %v510_v29  ;;  %v838_v23 = vpop.eup %837  ;;  %v544_v2 = vmul.f32 %v836_v47, %v1436_v15  ;;  %v283_v15 = vmul.f32 %v834_v6, %v1434_v14 }
 0x169   :  { %v444_v62 = vpop.xlane.xlu1 %443  ;;  %v234_v38 = vpop.xlane.xlu0 %233  ;;  %849 = vrsqrt.f32 %v250_v8  ;;  %v551_v7 = vmul.f32 %v838_v23, %v1444_v24  ;;  %v560_v18 = vadd.f32 %v559_v39, %v558_v3  ;;  %v1693_v3 = vld [vmem:[#allocation28_spill] sm:$0xff] }
 0x16a   :  { %v496_v49 = vmax.f32 %v444_v62, 1e-24  ;;  %v257_v22 = vmax.f32 %v234_v38, 1e-24  ;;  %851 = vrsqrt.f32 %v242_v56  ;;  %v840_v1 = vpop.eup %839  ;;  %v579_v38 = vadd.f32 %v578_v58, %v577_v30 }
 0x16b   :  { %v842_v29 = vpop.eup %841  ;;  %v344_v56 = vsel %vm173_vm2, %v297_v28, 0.0  ;;  %v580_v24 = vsel %vm426_vm1, %v544_v2, 0.0  ;;  %v291_v36 = vmul.f32 %v840_v1, %v1446_v25  ;;  %v599_v30 = vsel %vm426_vm1, %v551_v7, 0.0 }
 0x16c   :  { %853 = vrsqrt.f32 %v496_v49  ;;  %v345_v14 = vadd.f32 %v344_v56, %v343_v40  ;;  %v306_v25 = vsel %vm173_vm2, %v283_v15, 0.0  ;;  %v581_v46 = vadd.f32 %v580_v24, %v579_v38  ;;  %v1694_v40 = vld [vmem:[#allocation29_spill] sm:$0xff] }
 0x16d   :  { %v191_v44 = vpop.xlane.xlu1 %190  ;;  %v469_v0 = vpop.xlane.xlu0 %468  ;;  %855 = vrsqrt.f32 %v257_v22  ;;  %v537_v22 = vmul.f32 %v842_v29, %v1454_v32  ;;  %v600_v47 = vadd.f32 %v599_v30, %v598_v41  ;;  %v307_v63 = vadd.f32 %v306_v25, %v305_v59  ;;  %v1695_v59 = vld [vmem:[#allocation27_spill] sm:$0xff] }
 0x16e   :  { %v504_v57 = vmax.f32 %v469_v0, 1e-24  ;;  %v243_v21 = vmax.f32 %v191_v44, 1e-24  ;;  %v844_v35 = vpop.eup %843 }
 0x16f   :  { %v846_v62 = vpop.eup %845  ;;  %v545_v16 = vmul.f32 %v844_v35, %v1466_v43  ;;  %v561_v52 = vsel %vm426_vm1, %v537_v22, 0.0 }
 0x170   :  { %857 = vrsqrt.f32 %v504_v57  ;;  %v298_v37 = vmul.f32 %v846_v62, %v1456_v33  ;;  %v327_v33 = vsel %vm173_vm2, %v291_v36, 0.0 }
 0x171   :  { %v490_v45 = vpop.xlane.xlu1 %489  ;;  %v216_v10 = vpop.xlane.xlu0 %215  ;;  %859 = vrsqrt.f32 %v243_v21  ;;  %v582_v32 = vsel %vm426_vm1, %v545_v16, 0.0  ;;  %v328_v28 = vadd.f32 %v327_v33, %v326_v12  ;;  %v1697_v12 = vld [vmem:[#allocation31_spill] sm:$0xff] }
 0x172   :  { %v511_v8 = vmax.f32 %v490_v45, 1e-24  ;;  %v251_v4 = vmax.f32 %v216_v10, 1e-24  ;;  %v848_v48 = vpop.eup %847  ;;  %v583_v19 = vadd.f32 %v582_v32, %v581_v46  ;;  %v562_v45 = vadd.f32 %v561_v52, %v560_v18 }
 0x173   :  { %v850_v54 = vpop.eup %849  ;;  %v552_v43 = vmul.f32 %v848_v48, %v1474_v50  ;;  %v346_v50 = vsel %vm173_vm2, %v298_v37, 0.0 }
 0x174   :  { %861 = vrsqrt.f32 %v511_v8  ;;  %v852_v26 = vpop.eup %851  ;;  %v292_v44 = vmul.f32 %v850_v54, %v1476_v51  ;;  %v347_v29 = vadd.f32 %v346_v50, %v345_v14  ;;  %v1696_v54 = vld [vmem:[#allocation30_spill] sm:$0xff] }
 0x175   :  { %863 = vrsqrt.f32 %v251_v4  ;;  %v448_v9 = vpop.xlane.xlu1 %447  ;;  %v237_v34 = vpop.xlane.xlu0 %236  ;;  %v284_v27 = vmul.f32 %v852_v26, %v1464_v42  ;;  %v601_v53 = vsel %vm426_vm1, %v552_v43, 0.0 }
 0x176   :  { %v497_v49 = vmax.f32 %v448_v9, 1e-24  ;;  %v258_v17 = vmax.f32 %v237_v34, 1e-24  ;;  %v854_v31 = vpop.eup %853  ;;  %v329_v13 = vsel %vm173_vm2, %v292_v44, 0.0  ;;  %v602_v8 = vadd.f32 %v601_v53, %v600_v47 }
 0x177   :  { %v856_v6 = vpop.eup %855  ;;  %v538_v51 = vmul.f32 %v854_v31, %v1484_v60  ;;  %v308_v60 = vsel %vm173_vm2, %v284_v27, 0.0  ;;  %v330_v4 = vadd.f32 %v329_v13, %v328_v28 }
 0x178   :  { %865 = vrsqrt.f32 %v497_v49  ;;  %v299_v1 = vmul.f32 %v856_v6, %v1486_v61  ;;  %v309_v56 = vadd.f32 %v308_v60, %v307_v63 }
 0x179   :  { %867 = vrsqrt.f32 %v258_v17  ;;  %v195_v0 = vpop.xlane.xlu0 %194  ;;  %v563_v35 = vsel %vm426_vm1, %v538_v51, 0.0 }
 0x17a   :  { %v244_v55 = vmax.f32 %v195_v0, 1e-24  ;;  %v858_v57 = vpop.eup %857  ;;  %v348_v61 = vsel %vm173_vm2, %v299_v1, 0.0  ;;  %v564_v16 = vadd.f32 %v563_v35, %v562_v45  ;;  %v1698_v0 = vld [vmem:[#allocation32_spill] sm:$0xff] }
 0x17b   :  { %v546_v21 = vmul.f32 %v858_v57, %v1496_v11  ;;  %v860_v23 = vpop.eup %859  ;;  %v349_v49 = vadd.f32 %v348_v61, %v347_v29  ;;  %v758_v29 = vld [vmem:[#allocation10] ss:$0 sm:$0xff] }
 0x17c   :  { %869 = vrsqrt.f32 %v244_v55  ;;  %v285_v62 = vmul.f32 %v860_v23, %v1695_v59 }
 0x17d   :  { %v584_v42 = vsel %vm445_vm3, %v546_v21, 0.0 }
 0x17e   :  { %v862_v58 = vpop.eup %861  ;;  %v585_v11 = vadd.f32 %v584_v42, %v583_v19  ;;  %v310_v36 = vsel %vm173_vm2, %v285_v62, 0.0 }
 0x17f   :  { %v864_v10 = vpop.eup %863  ;;  %v553_v20 = vmul.f32 %v862_v58, %v1693_v3  ;;  %v311_v46 = vadd.f32 %v310_v36, %v309_v56 }
 0x180   :  { %v293_v2 = vmul.f32 %v864_v10, %v1694_v40  ;;  %v586_v38 = vrot.slane %v585_v11, 4 }
 0x181   :  { %v603_v5 = vsel %vm445_vm3, %v553_v20, 0.0 }
 0x182   :  { %v866_v7 = vpop.eup %865  ;;  %v604_v48 = vadd.f32 %v603_v5, %v602_v8  ;;  %v331_v41 = vsel %vm192_vm4, %v293_v2, 0.0  ;;  %v587_v9 = vadd.f32 %v586_v38, %v585_v11  ;;  %v757_v38 = vld [vmem:[#allocation8] ss:$0 sm:$0xff] }
 0x183   :  { %v868_v39 = vpop.eup %867  ;;  %v332_v34 = vadd.f32 %v331_v41, %v330_v4  ;;  %v539_v15 = vmul.f32 %v866_v7, %v1696_v54 }
 0x184   :  { %v605_v17 = vrot.slane %v604_v48, 4  ;;  %v300_v24 = vmul.f32 %v868_v39, %v1697_v12  ;;  %v588_v18 = vrot.slane %v587_v9, 2 }
 0x185   :  { %v333_v22 = vrot.slane %v332_v34, 4  ;;  %v565_v26 = vsel %vm445_vm3, %v539_v15, 0.0 }
 0x186   :  { %v870_v30 = vpop.eup %869  ;;  %v566_v37 = vadd.f32 %v565_v26, %v564_v16  ;;  %v350_v31 = vsel %vm192_vm4, %v300_v24, 0.0  ;;  %v606_v14 = vadd.f32 %v605_v17, %v604_v48  ;;  %v589_v25 = vadd.f32 %v588_v18, %v587_v9 }
 0x187   :  { %v334_v43 = vadd.f32 %v333_v22, %v332_v34  ;;  %v351_v44 = vadd.f32 %v350_v31, %v349_v49  ;;  %v286_v6 = vmul.f32 %v870_v30, %v1698_v0 }
 0x188   :  { %v567_v32 = vrot.slane %v566_v37, 4  ;;  %v607_v55 = vrot.slane %v606_v14, 2  ;;  %v590_v33 = vrot.slane %v589_v25, 1 }
 0x189   :  { %v352_v57 = vrot.slane %v351_v44, 4  ;;  %v312_v47 = vsel %vm192_vm4, %v286_v6, 0.0  ;;  %v335_v52 = vrot.slane %v334_v43, 2 }
 0x18a   :  { %v568_v27 = vadd.f32 %v567_v32, %v566_v37  ;;  %v313_v50 = vadd.f32 %v312_v47, %v311_v46  ;;  %v608_v51 = vadd.f32 %v607_v55, %v606_v14  ;;  %v591_v21 = vadd.f32 %v590_v33, %v589_v25 }
 0x18b   :  { %v336_v23 = vadd.f32 %v335_v52, %v334_v43  ;;  %v353_v19 = vadd.f32 %v352_v57, %v351_v44 }
 0x18c   :  { %v314_v53 = vrot.slane %v313_v50, 4  ;;  %v569_v13 = vrot.slane %v568_v27, 2  ;;  %v609_v1 = vrot.slane %v608_v51, 1  ;;  %v612_v10 = vmul.f32 0.020408163, %v591_v21 }
 0x18d   :  { %v337_v58 = vrot.slane %v336_v23, 1  ;;  %v354_v63 = vrot.slane %v353_v19, 2 }
 0x18e   :  { %v315_v28 = vadd.f32 %v314_v53, %v313_v50  ;;  %v570_v45 = vadd.f32 %v569_v13, %v568_v27  ;;  %v610_v42 = vadd.f32 %v609_v1, %v608_v51  ;;  %v622_v40 = vmul.f32 %v758_v29, %v612_v10 }
 0x18f   :  { %v338_v60 = vadd.f32 %v337_v58, %v336_v23  ;;  %v355_v11 = vadd.f32 %v354_v63, %v353_v19 }
 0x190   :  { %v571_v3 = vrot.slane %v570_v45, 1  ;;  %v613_v20 = vmul.f32 0.020408163, %v610_v42  ;;  %v316_v8 = vrot.slane %v315_v28, 2  ;;  %v627_v39 = vrot.slane %v622_v40, 7 }
 0x191   :  { %v356_v4 = vrot.slane %v355_v11, 1  ;;  %v360_v61 = vmul.f32 0.020408163, %v338_v60 }
 0x192   :  { %v572_v35 = vadd.f32 %v571_v3, %v570_v45  ;;  %v317_v2 = vadd.f32 %v316_v8, %v315_v28  ;;  %v623_v59 = vmul.f32 %v758_v29, %v613_v20 }
 0x193   :  { %v357_v62 = vadd.f32 %v356_v4, %v355_v11  ;;  %v370_v9 = vmul.f32 %v757_v38, %v360_v61 }
 0x194   :  { %v611_v5 = vmul.f32 0.020408163, %v572_v35  ;;  %v318_v7 = vrot.slane %v317_v2, 1  ;;  %v629_v34 = vrot.slane %v623_v59, 6 }
 0x195   :  { %v361_v48 = vmul.f32 0.020408163, %v357_v62  ;;  %v375_v12 = vrot.slane %v370_v9, 7 }
 0x196   :  { %v621_v41 = vmul.f32 %v758_v29, %v611_v5  ;;  %v319_v56 = vadd.f32 %v318_v7, %v317_v2 }
 0x197   :  { %v371_v54 = vmul.f32 %v757_v38, %v361_v48 }
 0x198   :  { %v628_v15 = vsel %vm376_vm5, %v627_v39, %v621_v41  ;;  %v359_v16 = vmul.f32 0.020408163, %v319_v56 }
 0x199   :  { %v630_v49 = vsel %vm379_vm6, %v629_v34, %v628_v15 }
 0x19a   :  { %633 = vst.msk [vmem:[#allocation17] sm:$0x7] %vm632_vm7, %v630_v49  ;;  %v369_v17 = vmul.f32 %v757_v38, %v359_v16 }
 0x19b   :  { %1058 = shalt.err (!%p1055_p12)
}
 0x19c   :  { %s1059_s12 = scalar_lea.hbm %s1679_s9, 64 }
 0x19d   :  { %p1060_p13 = scmp.ne.s32.totalorder %s1679_s9, %s1059_s12  ;;  %p1063_p0 = scmp.lt.u32.totalorder %s1059_s12, %s1679_s9 }
 0x19f   :  { %p1065_p1 = pnand %p1063_p0, %p1060_p13 }
 0x1a1   :  { %1068 = shalt.err (!%p1065_p1)
}
 0x1a2   :  { %730 = dma.vmem_to_hbm [thread:$0]  %s728_s2, 64, %s1679_s9, [#allocation18]   ;;  %v378_v24 = vrot.slane %v371_v54, 6  ;;  %vm382_vm8 = vcmask 256000   ;;  %v377_v36 = vsel %vm376_vm5, %v375_v12, %v369_v17 }
 0x1a3   :  { %s1069_s4 = scalar_lea.vmem %s718_s27, 64  ;;  %p1074_p3 = scmp.lt.s32.totalorder %s718_s27, %s718_s27 }
 0x1a4   :  { %v380_v22 = vsel %vm379_vm6, %v378_v24, %v377_v36  ;;  %p1070_p2 = scmp.ne.s32.totalorder %s718_s27, %s1069_s4  ;;  %p1075_p4 = scmp.lt.s32.totalorder %s1069_s4, %s1069_s4 }
 0x1a5   :  { %383 = vst.msk [vmem:[#allocation16] sm:$0x7] %vm382_vm8, %v380_v22 }
 0x1a6   :  { %p1076_p5 = por %p1075_p4, %p1074_p3 }
 0x1a8   :  { %p1077_p6 = pnand %p1076_p5, %p1070_p2 }
 0x1aa   :  { %1080 = shalt.err (!%p1077_p6)
}
 0x1ab   :  { %s1081_s9 = scalar_lea.hbm %s1678_s8, 64 }
 0x1ac   :  { %p1082_p7 = scmp.ne.s32.totalorder %s1678_s8, %s1081_s9  ;;  %p1085_p8 = scmp.lt.u32.totalorder %s1081_s9, %s1678_s8 }
 0x1ae   :  { %p1087_p9 = pnand %p1085_p8, %p1082_p7 }
 0x1b0   :  { %1090 = shalt.err (!%p1087_p9)
}
 0x1b1   :  { %720 = dma.vmem_to_hbm [thread:$0]  %s718_s27, 64, %s1678_s8, [#allocation4]   ;;  %v664_v26 = vlaneseq  ;;  %v651_v37 = vld [vmem:[#allocation13] sm:$0x1f]  ;;  %v760_v6 = vld [vmem:[#allocation14] ss:$0 sm:$0xff] }
 0x1b2   :  { %s1144_s8 = smov [#allocation19]  }
 0x1b3   :  { %v665_v18 = vshrl.u32 %v664_v26, 7  ;;  %s737_s20 = sshll.u32 %s1144_s8, 4  ;;  %s738_s20 = int_to_ptr.vmem [resolvable:$true] %s737_s20 }
 0x1b4   :  { %s1091_s22 = scalar_lea.vmem %s738_s20, 64  ;;  %p1096_p11 = scmp.lt.s32.totalorder %s738_s20, %s738_s20 }
 0x1b5   :  { %v666_v30 = vsub.s32 0, %v665_v18  ;;  %v676_v43 = vsub.s32 1, %v665_v18  ;;  %v686_v0 = vsub.s32 2, %v665_v18  ;;  %v696_v46 = vsub.s32 3, %v665_v18  ;;  %p1092_p10 = scmp.ne.s32.totalorder %s738_s20, %s1091_s22  ;;  %p1097_p12 = scmp.lt.s32.totalorder %s1091_s22, %s1091_s22 }
 0x1b6   :  { %v662_v14 = vpop.permute.xlu1 %661  ;;  %v672_v32 = vpop.permute.xlu0 %671  ;;  %v706_v27 = vsub.s32 4, %v665_v18 }
 0x1b7   :  { %v667_v31 = vrot.slane %v651_v37, %v666_v30  ;;  %v677_v25 = vrot.slane %v651_v37, %v676_v43  ;;  %v687_v47 = vrot.slane %v651_v37, %v686_v0  ;;  %v697_v52 = vrot.slane %v651_v37, %v696_v46  ;;  %p1098_p13 = por %p1097_p12, %p1096_p11 }
 0x1b8   :  { %v707_v19 = vrot.slane %v651_v37, %v706_v27 }
 0x1b9   :  { %v668_v44 = vmul.f32 %v667_v31, %v662_v14  ;;  %v678_v33 = vmul.f32 %v677_v25, %v672_v32  ;;  %p1099_p0 = pnand %p1098_p13, %p1092_p10 }
 0x1bb   :  { %v682_v55 = vpop.permute.xlu1 %681  ;;  %v669_v57 = vadd.f32 %v760_v6, %v668_v44 }
 0x1bc   :  { %v688_v51 = vmul.f32 %v687_v47, %v682_v55 }
 0x1bd   :  { %v679_v50 = vadd.f32 %v678_v33, %v669_v57 }
 0x1bf   :  { %v689_v53 = vadd.f32 %v688_v51, %v679_v50 }
 0x1c0   :  { %v692_v21 = vpop.permute.xlu1 %691 }
 0x1c1   :  { %v698_v23 = vmul.f32 %v697_v52, %v692_v21 }
 0x1c3   :  { %v699_v1 = vadd.f32 %v698_v23, %v689_v53 }
 0x1c5   :  { %v702_v13 = vpop.permute.xlu1 %701 }
 0x1c6   :  { %v708_v58 = vmul.f32 %v707_v19, %v702_v13 }
 0x1c8   :  { %v709_v63 = vadd.f32 %v708_v58, %v699_v1 }
 0x1ca   :  { %710 = vst.msk [vmem:[#allocation19] sm:$0x7] %vm382_vm8, %v709_v63 }
 0x1cb   :  { %1102 = shalt.err (!%p1099_p0)
}
 0x1cc   :  { %s1103_s5 = scalar_lea.hbm %s1680_s10, 64 }
 0x1cd   :  { %p1104_p1 = scmp.ne.s32.totalorder %s1680_s10, %s1103_s5  ;;  %p1107_p2 = scmp.lt.u32.totalorder %s1103_s5, %s1680_s10 }
 0x1cf   :  { %p1109_p3 = pnand %p1107_p2, %p1104_p1 }
 0x1d1   :  { %1112 = shalt.err (!%p1109_p3)
}
 0x1d2   :  { %740 = dma.vmem_to_hbm [thread:$0]  %s738_s20, 64, %s1680_s10, [#allocation18]  }
 0x1d3   :  { %1123 = dma.done.wait [#allocation4], 64  }
 0x1d4   :  { %1124 = vsyncadd [#allocation4], 4294967232 }
 0x1d5   :  { %1125 = dma.done.wait [#allocation18], 128  }
 0x1d6   :  { %1126 = vsyncadd [#allocation18], 4294967168 }
 0x1d7   :  { %750 = vsyncpa [#allocation3], 1 }
 0x1d8   :  { %751 = vsyncpa [#allocation6], 1 }
 0x1d9   :  { %752 = vsyncpa [#allocation9], 1 }
 0x1da   :  { %753 = vsyncpa [#allocation12], 1 }
 0x1db   :  { %754 = vsyncpa [#allocation15], 1 }
 0x1dc   :  { %755 = vsyncpa [#allocation4], 1 }
 0x1dd   :  { %756 = vsyncpa [#allocation18], 1 }

</bundles_post_ra>
